<compile_context>
chip_gen: v5e
topology: v5e:2x2
jax: 0.10.0
libtpu: 0.0.40
codegen_flags: <defaults>
</compile_context>

<pallas_src>
import functools

import jax
import jax.numpy as jnp
from jax import lax
from jax.experimental import pallas as pl
from jax.experimental.pallas import tpu as pltpu


def rcab_kernel(x_ref, w1_ref, b1_ref, w2_ref, b2_ref,
                wf1_ref, bf1_ref, wf2t_ref, bf2_ref, m_ref,
                o_ref, *, H, W, NB):
    HW = H * W
    L = NB * HW

    def conv3x3(src, w_ref, b_ref):
        # Centre tap first (no roll, no mask), then the 8 shifted taps.
        acc = jnp.dot(w_ref[4], src, preferred_element_type=jnp.float32)
        for ky in range(3):
            for kx in range(3):
                j = ky * 3 + kx
                if j == 4:
                    continue
                off = (ky - 1) * W + (kx - 1)
                # window[p] = src[p + off]  ==  roll by -off (cyclic); any
                # wrap-around lane (row/image/array boundary) is an
                # out-of-bounds tap and is zeroed by the per-tap mask.
                win = pltpu.roll(src, shift=(-off) % L, axis=1)
                win = win * m_ref[j:j + 1, :]
                acc = acc + jnp.dot(w_ref[j], win,
                                    preferred_element_type=jnp.float32)
        return acc + b_ref[...]

    x = x_ref[0]                                               # (C, L)
    h1 = jnp.maximum(conv3x3(x, w1_ref, b1_ref), 0.0)          # (C, L)
    h2 = conv3x3(h1, w2_ref, b2_ref)                           # (C, L)

    # ---- Channel attention (CALayer): tiny FCs on the VPU, per image ----
    wf1 = wf1_ref[...]
    bf1 = bf1_ref[...]
    wf2t = wf2t_ref[...]
    bf2 = bf2_ref[...]
    for b in range(NB):
        sl = slice(b * HW, (b + 1) * HW)
        hb = h2[:, sl]                                         # (C, HW)
        pooled = jnp.mean(hb, axis=1, keepdims=True)           # (C, 1)
        z = jnp.maximum(
            jnp.sum(wf1 * pooled, axis=0, keepdims=True) + bf1, 0.0)   # (1, Cr)
        s = jax.nn.sigmoid(
            jnp.sum(wf2t * z, axis=1, keepdims=True) + bf2)            # (C, 1)
        # scale, (Dropout2d = identity in eval), residual add
        o_ref[0, :, sl] = (hb * s + x_ref[0, :, sl]).astype(o_ref.dtype)


def _images_per_step(n, hw):
    """Batch the whole batch into one step on single-TC chips; keep >=2
    balanced parallel steps on dual-TC (v7x) chips."""
    try:
        kind = jax.devices()[0].device_kind.lower()
    except Exception:
        kind = ""
    single_tc = ("v5" in kind) or ("v6" in kind)
    if not single_tc:
        return 1
    nb = min(n, max(1, 4096 // hw))   # cap lane width to bound vreg/VMEM use
    while n % nb:
        nb -= 1
    return max(nb, 1)


@jax.jit
def rcab_forward(x_nchw, params):
    """x_nchw: (N, C, H, W) float32. Returns (N, C, H, W)."""
    w1, b1, w2, b2, wf1, bf1, wf2, bf2 = params
    N, C, H, W = x_nchw.shape
    HW = H * W
    Cr = wf1.shape[1]

    NB = _images_per_step(N, HW)
    num_steps = N // NB
    L = NB * HW

    # Pack NB images side-by-side on the lane axis (b-major within a step).
    x = (x_nchw.reshape(num_steps, NB, C, HW)
         .transpose(0, 2, 1, 3).reshape(num_steps, C, L))

    # Conv weights HWIO (ky,kx,ci,co) -> (9, co, ci): tap j = ky*3 + kx.
    w1_taps = jnp.transpose(w1, (0, 1, 3, 2)).reshape(9, C, C)
    w2_taps = jnp.transpose(w2, (0, 1, 3, 2)).reshape(9, C, C)
    b1_c = b1.reshape(C, 1)
    b2_c = b2.reshape(C, 1)
    bf1_r = bf1.reshape(1, Cr)
    wf2_t = wf2.T                      # (C, Cr)
    bf2_c = bf2.reshape(C, 1)

    # Per-tap {0,1} boundary masks (left/right x top/bottom), built outside the
    # kernel so no iota / integer-mod is needed inside; tiled across NB images.
    ix = jnp.arange(HW, dtype=jnp.int32)
    xc = ix % W
    yr = ix // W
    rows = []
    for ky in range(3):
        for kx in range(3):
            dy, dx = ky - 1, kx - 1
            ok = ((xc + dx >= 0) & (xc + dx < W) &
                  (yr + dy >= 0) & (yr + dy < H))
            rows.append(ok.astype(jnp.float32))
    mask = jnp.tile(jnp.stack(rows, axis=0), (1, NB))          # (9, L)

    def full(shape):
        return pl.BlockSpec(shape, lambda n, _s=shape: (0,) * len(_s))

    kernel = functools.partial(rcab_kernel, H=H, W=W, NB=NB)

    out = pl.pallas_call(
        kernel,
        out_shape=jax.ShapeDtypeStruct((num_steps, C, L), x.dtype),
        grid_spec=pltpu.PrefetchScalarGridSpec(
            num_scalar_prefetch=0,
            grid=(num_steps,),
            in_specs=[
                pl.BlockSpec((1, C, L), lambda n: (n, 0, 0)),  # x
                full((9, C, C)),     # conv1 weight, per-tap
                full((C, 1)),        # conv1 bias
                full((9, C, C)),     # conv2 weight, per-tap
                full((C, 1)),        # conv2 bias
                full((C, Cr)),       # CA fc1 weight
                full((1, Cr)),       # CA fc1 bias
                full((C, Cr)),       # CA fc2 weight (transposed)
                full((C, 1)),        # CA fc2 bias
                full((9, L)),        # per-tap boundary masks
            ],
            out_specs=pl.BlockSpec((1, C, L), lambda n: (n, 0, 0)),
            scratch_shapes=[],       # no VMEM scratch needed anymore
        ),
        compiler_params=pltpu.CompilerParams(
            dimension_semantics=("parallel",)),
    )(x, w1_taps, b1_c, w2_taps, b2_c, wf1, bf1_r, wf2_t, bf2_c, mask)

    return (out.reshape(num_steps, C, NB, HW)
            .transpose(0, 2, 1, 3).reshape(N, C, H, W))


def rcab_reference(x_nchw, params):
    """Pure-JAX reference (NCHW, mirrors the PyTorch module in eval mode)."""
    w1, b1, w2, b2, wf1, bf1, wf2, bf2 = params
    to_oihw = lambda w: jnp.transpose(w, (3, 2, 0, 1))
    dn = lax.conv_dimension_numbers(x_nchw.shape, to_oihw(w1).shape,
                                    ("NCHW", "OIHW", "NCHW"))
    y = lax.conv_general_dilated(x_nchw, to_oihw(w1), (1, 1), "SAME",
                                 dimension_numbers=dn)
    y = y + b1[None, :, None, None]
    y = jnp.maximum(y, 0.0)
    y = lax.conv_general_dilated(y, to_oihw(w2), (1, 1), "SAME",
                                 dimension_numbers=dn)
    y = y + b2[None, :, None, None]
    pooled = jnp.mean(y, axis=(2, 3))                    # (N, C)
    z = jnp.maximum(pooled @ wf1 + bf1, 0.0)             # (N, Cr)
    s = jax.nn.sigmoid(z @ wf2 + bf2)                    # (N, C)
    return y * s[:, :, None, None] + x_nchw


def init_params(key, channel, reduction=16):
    cr = channel // reduction
    keys = jax.random.split(key, 8)
    scale3 = 1.0 / (channel * 9) ** 0.5
    scale1 = 1.0 / channel ** 0.5
    scale1r = 1.0 / max(cr, 1) ** 0.5
    w1 = jax.random.normal(keys[0], (3, 3, channel, channel), jnp.float32) * scale3
    b1 = jax.random.normal(keys[1], (channel,), jnp.float32) * 0.01
    w2 = jax.random.normal(keys[2], (3, 3, channel, channel), jnp.float32) * scale3
    b2 = jax.random.normal(keys[3], (channel,), jnp.float32) * 0.01
    wf1 = jax.random.normal(keys[4], (channel, cr), jnp.float32) * scale1
    bf1 = jax.random.normal(keys[5], (cr,), jnp.float32) * 0.01
    wf2 = jax.random.normal(keys[6], (cr, channel), jnp.float32) * scale1r
    bf2 = jax.random.normal(keys[7], (channel,), jnp.float32) * 0.01
    return (w1, b1, w2, b2, wf1, bf1, wf2, bf2)


if __name__ == "__main__":
    key = jax.random.PRNGKey(0)
    N, C, H, W = 2, 32, 16, 16          # channel=32, reduction=16 -> Cr=2
    k_x, k_p = jax.random.split(key)
    x = jax.random.normal(k_x, (N, C, H, W), jnp.float32)
    params = init_params(k_p, C, reduction=16)

    out = jax.block_until_ready(rcab_forward(x, params))
    ref = rcab_reference(x, params)

    assert out.shape == x.shape and out.dtype == x.dtype
    assert jnp.allclose(out, ref, rtol=1e-4, atol=1e-4), (
        float(jnp.max(jnp.abs(out - ref))))

    print("KERNEL_OK")
</pallas_src>

<mosaic_0001>
module attributes {stable_mosaic.version = 11 : i64} {
  func.func @rcab_kernel(%arg0: i32, %arg1: memref<1x32x256xf32, #tpu.memory_space<vmem>>, %arg2: memref<9x32x32xf32, #tpu.memory_space<vmem>>, %arg3: memref<32x1xf32, #tpu.memory_space<vmem>>, %arg4: memref<9x32x32xf32, #tpu.memory_space<vmem>>, %arg5: memref<32x1xf32, #tpu.memory_space<vmem>>, %arg6: memref<32x2xf32, #tpu.memory_space<vmem>>, %arg7: memref<1x2xf32, #tpu.memory_space<vmem>>, %arg8: memref<32x2xf32, #tpu.memory_space<vmem>>, %arg9: memref<32x1xf32, #tpu.memory_space<vmem>>, %arg10: memref<9x256xf32, #tpu.memory_space<vmem>>, %arg11: memref<1x32x256xf32, #tpu.memory_space<vmem>>) attributes {dimension_semantics = [#tpu.dimension_semantics<parallel>], iteration_bounds = array<i64: 2>, scalar_prefetch = 0 : i64, scratch_operands = 0 : i64, tpu.core_type = #tpu.core_type<tc>, window_params = [{transform_indices = @transform_0, window_bounds = array<i64: 1, 32, 256>}, {pipeline_mode = #tpu.pipeline_mode<synchronous>, transform_indices = @transform_1, window_bounds = array<i64: 9, 32, 32>}, {pipeline_mode = #tpu.pipeline_mode<synchronous>, transform_indices = @transform_2, window_bounds = array<i64: 32, 1>}, {pipeline_mode = #tpu.pipeline_mode<synchronous>, transform_indices = @transform_3, window_bounds = array<i64: 9, 32, 32>}, {pipeline_mode = #tpu.pipeline_mode<synchronous>, transform_indices = @transform_4, window_bounds = array<i64: 32, 1>}, {pipeline_mode = #tpu.pipeline_mode<synchronous>, transform_indices = @transform_5, window_bounds = array<i64: 32, 2>}, {pipeline_mode = #tpu.pipeline_mode<synchronous>, transform_indices = @transform_6, window_bounds = array<i64: 1, 2>}, {pipeline_mode = #tpu.pipeline_mode<synchronous>, transform_indices = @transform_7, window_bounds = array<i64: 32, 2>}, {pipeline_mode = #tpu.pipeline_mode<synchronous>, transform_indices = @transform_8, window_bounds = array<i64: 32, 1>}, {pipeline_mode = #tpu.pipeline_mode<synchronous>, transform_indices = @transform_9, window_bounds = array<i64: 9, 256>}, {transform_indices = @transform_10, window_bounds = array<i64: 1, 32, 256>}]} {
    %c0 = arith.constant 0 : index
    %c0_0 = arith.constant 0 : index
    %c0_1 = arith.constant 0 : index
    %0 = vector.load %arg1[%c0, %c0_0, %c0_1] : memref<1x32x256xf32, #tpu.memory_space<vmem>>, vector<1x32x256xf32>
    %1 = vector.shape_cast %0 : vector<1x32x256xf32> to vector<32x256xf32>
    %c4 = arith.constant 4 : index
    %c0_2 = arith.constant 0 : index
    %c0_3 = arith.constant 0 : index
    %2 = vector.load %arg2[%c4, %c0_2, %c0_3] : memref<9x32x32xf32, #tpu.memory_space<vmem>>, vector<1x32x32xf32>
    %3 = vector.shape_cast %2 : vector<1x32x32xf32> to vector<32x32xf32>
    %cst = arith.constant dense<0.000000e+00> : vector<32x256xf32>
    %4 = tpu.matmul %3, %1, %cst {dimension_numbers = #tpu.dot_dimension_numbers<[1], [0], [0], [1], [0, 0, 1, 1], [], []>} : vector<32x32xf32>, vector<32x256xf32>, vector<32x256xf32> -> vector<32x256xf32>
    %c17_i32 = arith.constant 17 : i32
    %5 = tpu.dynamic_rotate %1 by %c17_i32 dim 1 : vector<32x256xf32>, i32 -> vector<32x256xf32>
    %c0_4 = arith.constant 0 : index
    %c0_5 = arith.constant 0 : index
    %6 = vector.load %arg10[%c0_4, %c0_5] : memref<9x256xf32, #tpu.memory_space<vmem>>, vector<1x256xf32>
    %7 = vector.broadcast %6 : vector<1x256xf32> to vector<32x256xf32>
    %8 = arith.mulf %5, %7 : vector<32x256xf32>
    %c0_6 = arith.constant 0 : index
    %c0_7 = arith.constant 0 : index
    %c0_8 = arith.constant 0 : index
    %9 = vector.load %arg2[%c0_6, %c0_7, %c0_8] : memref<9x32x32xf32, #tpu.memory_space<vmem>>, vector<1x32x32xf32>
    %10 = vector.shape_cast %9 : vector<1x32x32xf32> to vector<32x32xf32>
    %cst_9 = arith.constant dense<0.000000e+00> : vector<32x256xf32>
    %11 = tpu.matmul %10, %8, %cst_9 {dimension_numbers = #tpu.dot_dimension_numbers<[1], [0], [0], [1], [0, 0, 1, 1], [], []>} : vector<32x32xf32>, vector<32x256xf32>, vector<32x256xf32> -> vector<32x256xf32>
    %12 = arith.addf %4, %11 : vector<32x256xf32>
    %c16_i32 = arith.constant 16 : i32
    %13 = tpu.dynamic_rotate %1 by %c16_i32 dim 1 : vector<32x256xf32>, i32 -> vector<32x256xf32>
    %c1 = arith.constant 1 : index
    %c0_10 = arith.constant 0 : index
    %14 = vector.load %arg10[%c1, %c0_10] : memref<9x256xf32, #tpu.memory_space<vmem>>, vector<1x256xf32>
    %15 = vector.broadcast %14 : vector<1x256xf32> to vector<32x256xf32>
    %16 = arith.mulf %13, %15 : vector<32x256xf32>
    %c1_11 = arith.constant 1 : index
    %c0_12 = arith.constant 0 : index
    %c0_13 = arith.constant 0 : index
    %17 = vector.load %arg2[%c1_11, %c0_12, %c0_13] : memref<9x32x32xf32, #tpu.memory_space<vmem>>, vector<1x32x32xf32>
    %18 = vector.shape_cast %17 : vector<1x32x32xf32> to vector<32x32xf32>
    %cst_14 = arith.constant dense<0.000000e+00> : vector<32x256xf32>
    %19 = tpu.matmul %18, %16, %cst_14 {dimension_numbers = #tpu.dot_dimension_numbers<[1], [0], [0], [1], [0, 0, 1, 1], [], []>} : vector<32x32xf32>, vector<32x256xf32>, vector<32x256xf32> -> vector<32x256xf32>
    %20 = arith.addf %12, %19 : vector<32x256xf32>
    %c15_i32 = arith.constant 15 : i32
    %21 = tpu.dynamic_rotate %1 by %c15_i32 dim 1 : vector<32x256xf32>, i32 -> vector<32x256xf32>
    %c2 = arith.constant 2 : index
    %c0_15 = arith.constant 0 : index
    %22 = vector.load %arg10[%c2, %c0_15] : memref<9x256xf32, #tpu.memory_space<vmem>>, vector<1x256xf32>
    %23 = vector.broadcast %22 : vector<1x256xf32> to vector<32x256xf32>
    %24 = arith.mulf %21, %23 : vector<32x256xf32>
    %c2_16 = arith.constant 2 : index
    %c0_17 = arith.constant 0 : index
    %c0_18 = arith.constant 0 : index
    %25 = vector.load %arg2[%c2_16, %c0_17, %c0_18] : memref<9x32x32xf32, #tpu.memory_space<vmem>>, vector<1x32x32xf32>
    %26 = vector.shape_cast %25 : vector<1x32x32xf32> to vector<32x32xf32>
    %cst_19 = arith.constant dense<0.000000e+00> : vector<32x256xf32>
    %27 = tpu.matmul %26, %24, %cst_19 {dimension_numbers = #tpu.dot_dimension_numbers<[1], [0], [0], [1], [0, 0, 1, 1], [], []>} : vector<32x32xf32>, vector<32x256xf32>, vector<32x256xf32> -> vector<32x256xf32>
    %28 = arith.addf %20, %27 : vector<32x256xf32>
    %c1_i32 = arith.constant 1 : i32
    %29 = tpu.dynamic_rotate %1 by %c1_i32 dim 1 : vector<32x256xf32>, i32 -> vector<32x256xf32>
    %c3 = arith.constant 3 : index
    %c0_20 = arith.constant 0 : index
    %30 = vector.load %arg10[%c3, %c0_20] : memref<9x256xf32, #tpu.memory_space<vmem>>, vector<1x256xf32>
    %31 = vector.broadcast %30 : vector<1x256xf32> to vector<32x256xf32>
    %32 = arith.mulf %29, %31 : vector<32x256xf32>
    %c3_21 = arith.constant 3 : index
    %c0_22 = arith.constant 0 : index
    %c0_23 = arith.constant 0 : index
    %33 = vector.load %arg2[%c3_21, %c0_22, %c0_23] : memref<9x32x32xf32, #tpu.memory_space<vmem>>, vector<1x32x32xf32>
    %34 = vector.shape_cast %33 : vector<1x32x32xf32> to vector<32x32xf32>
    %cst_24 = arith.constant dense<0.000000e+00> : vector<32x256xf32>
    %35 = tpu.matmul %34, %32, %cst_24 {dimension_numbers = #tpu.dot_dimension_numbers<[1], [0], [0], [1], [0, 0, 1, 1], [], []>} : vector<32x32xf32>, vector<32x256xf32>, vector<32x256xf32> -> vector<32x256xf32>
    %36 = arith.addf %28, %35 : vector<32x256xf32>
    %c255_i32 = arith.constant 255 : i32
    %37 = tpu.dynamic_rotate %1 by %c255_i32 dim 1 : vector<32x256xf32>, i32 -> vector<32x256xf32>
    %c5 = arith.constant 5 : index
    %c0_25 = arith.constant 0 : index
    %38 = vector.load %arg10[%c5, %c0_25] : memref<9x256xf32, #tpu.memory_space<vmem>>, vector<1x256xf32>
    %39 = vector.broadcast %38 : vector<1x256xf32> to vector<32x256xf32>
    %40 = arith.mulf %37, %39 : vector<32x256xf32>
    %c5_26 = arith.constant 5 : index
    %c0_27 = arith.constant 0 : index
    %c0_28 = arith.constant 0 : index
    %41 = vector.load %arg2[%c5_26, %c0_27, %c0_28] : memref<9x32x32xf32, #tpu.memory_space<vmem>>, vector<1x32x32xf32>
    %42 = vector.shape_cast %41 : vector<1x32x32xf32> to vector<32x32xf32>
    %cst_29 = arith.constant dense<0.000000e+00> : vector<32x256xf32>
    %43 = tpu.matmul %42, %40, %cst_29 {dimension_numbers = #tpu.dot_dimension_numbers<[1], [0], [0], [1], [0, 0, 1, 1], [], []>} : vector<32x32xf32>, vector<32x256xf32>, vector<32x256xf32> -> vector<32x256xf32>
    %44 = arith.addf %36, %43 : vector<32x256xf32>
    %c241_i32 = arith.constant 241 : i32
    %45 = tpu.dynamic_rotate %1 by %c241_i32 dim 1 : vector<32x256xf32>, i32 -> vector<32x256xf32>
    %c6 = arith.constant 6 : index
    %c0_30 = arith.constant 0 : index
    %46 = vector.load %arg10[%c6, %c0_30] : memref<9x256xf32, #tpu.memory_space<vmem>>, vector<1x256xf32>
    %47 = vector.broadcast %46 : vector<1x256xf32> to vector<32x256xf32>
    %48 = arith.mulf %45, %47 : vector<32x256xf32>
    %c6_31 = arith.constant 6 : index
    %c0_32 = arith.constant 0 : index
    %c0_33 = arith.constant 0 : index
    %49 = vector.load %arg2[%c6_31, %c0_32, %c0_33] : memref<9x32x32xf32, #tpu.memory_space<vmem>>, vector<1x32x32xf32>
    %50 = vector.shape_cast %49 : vector<1x32x32xf32> to vector<32x32xf32>
    %cst_34 = arith.constant dense<0.000000e+00> : vector<32x256xf32>
    %51 = tpu.matmul %50, %48, %cst_34 {dimension_numbers = #tpu.dot_dimension_numbers<[1], [0], [0], [1], [0, 0, 1, 1], [], []>} : vector<32x32xf32>, vector<32x256xf32>, vector<32x256xf32> -> vector<32x256xf32>
    %52 = arith.addf %44, %51 : vector<32x256xf32>
    %c240_i32 = arith.constant 240 : i32
    %53 = tpu.dynamic_rotate %1 by %c240_i32 dim 1 : vector<32x256xf32>, i32 -> vector<32x256xf32>
    %c7 = arith.constant 7 : index
    %c0_35 = arith.constant 0 : index
    %54 = vector.load %arg10[%c7, %c0_35] : memref<9x256xf32, #tpu.memory_space<vmem>>, vector<1x256xf32>
    %55 = vector.broadcast %54 : vector<1x256xf32> to vector<32x256xf32>
    %56 = arith.mulf %53, %55 : vector<32x256xf32>
    %c7_36 = arith.constant 7 : index
    %c0_37 = arith.constant 0 : index
    %c0_38 = arith.constant 0 : index
    %57 = vector.load %arg2[%c7_36, %c0_37, %c0_38] : memref<9x32x32xf32, #tpu.memory_space<vmem>>, vector<1x32x32xf32>
    %58 = vector.shape_cast %57 : vector<1x32x32xf32> to vector<32x32xf32>
    %cst_39 = arith.constant dense<0.000000e+00> : vector<32x256xf32>
    %59 = tpu.matmul %58, %56, %cst_39 {dimension_numbers = #tpu.dot_dimension_numbers<[1], [0], [0], [1], [0, 0, 1, 1], [], []>} : vector<32x32xf32>, vector<32x256xf32>, vector<32x256xf32> -> vector<32x256xf32>
    %60 = arith.addf %52, %59 : vector<32x256xf32>
    %c239_i32 = arith.constant 239 : i32
    %61 = tpu.dynamic_rotate %1 by %c239_i32 dim 1 : vector<32x256xf32>, i32 -> vector<32x256xf32>
    %c8 = arith.constant 8 : index
    %c0_40 = arith.constant 0 : index
    %62 = vector.load %arg10[%c8, %c0_40] : memref<9x256xf32, #tpu.memory_space<vmem>>, vector<1x256xf32>
    %63 = vector.broadcast %62 : vector<1x256xf32> to vector<32x256xf32>
    %64 = arith.mulf %61, %63 : vector<32x256xf32>
    %c8_41 = arith.constant 8 : index
    %c0_42 = arith.constant 0 : index
    %c0_43 = arith.constant 0 : index
    %65 = vector.load %arg2[%c8_41, %c0_42, %c0_43] : memref<9x32x32xf32, #tpu.memory_space<vmem>>, vector<1x32x32xf32>
    %66 = vector.shape_cast %65 : vector<1x32x32xf32> to vector<32x32xf32>
    %cst_44 = arith.constant dense<0.000000e+00> : vector<32x256xf32>
    %67 = tpu.matmul %66, %64, %cst_44 {dimension_numbers = #tpu.dot_dimension_numbers<[1], [0], [0], [1], [0, 0, 1, 1], [], []>} : vector<32x32xf32>, vector<32x256xf32>, vector<32x256xf32> -> vector<32x256xf32>
    %68 = arith.addf %60, %67 : vector<32x256xf32>
    %c0_45 = arith.constant 0 : index
    %c0_46 = arith.constant 0 : index
    %69 = vector.load %arg3[%c0_45, %c0_46] : memref<32x1xf32, #tpu.memory_space<vmem>>, vector<32x1xf32>
    %70 = vector.broadcast %69 : vector<32x1xf32> to vector<32x256xf32>
    %71 = arith.addf %68, %70 : vector<32x256xf32>
    %cst_47 = arith.constant 0.000000e+00 : f32
    %72 = vector.broadcast %cst_47 : f32 to vector<32x256xf32>
    %73 = arith.maximumf %71, %72 : vector<32x256xf32>
    %c4_48 = arith.constant 4 : index
    %c0_49 = arith.constant 0 : index
    %c0_50 = arith.constant 0 : index
    %74 = vector.load %arg4[%c4_48, %c0_49, %c0_50] : memref<9x32x32xf32, #tpu.memory_space<vmem>>, vector<1x32x32xf32>
    %75 = vector.shape_cast %74 : vector<1x32x32xf32> to vector<32x32xf32>
    %cst_51 = arith.constant dense<0.000000e+00> : vector<32x256xf32>
    %76 = tpu.matmul %75, %73, %cst_51 {dimension_numbers = #tpu.dot_dimension_numbers<[1], [0], [0], [1], [0, 0, 1, 1], [], []>} : vector<32x32xf32>, vector<32x256xf32>, vector<32x256xf32> -> vector<32x256xf32>
    %c17_i32_52 = arith.constant 17 : i32
    %77 = tpu.dynamic_rotate %73 by %c17_i32_52 dim 1 : vector<32x256xf32>, i32 -> vector<32x256xf32>
    %c0_53 = arith.constant 0 : index
    %c0_54 = arith.constant 0 : index
    %78 = vector.load %arg10[%c0_53, %c0_54] : memref<9x256xf32, #tpu.memory_space<vmem>>, vector<1x256xf32>
    %79 = vector.broadcast %78 : vector<1x256xf32> to vector<32x256xf32>
    %80 = arith.mulf %77, %79 : vector<32x256xf32>
    %c0_55 = arith.constant 0 : index
    %c0_56 = arith.constant 0 : index
    %c0_57 = arith.constant 0 : index
    %81 = vector.load %arg4[%c0_55, %c0_56, %c0_57] : memref<9x32x32xf32, #tpu.memory_space<vmem>>, vector<1x32x32xf32>
    %82 = vector.shape_cast %81 : vector<1x32x32xf32> to vector<32x32xf32>
    %cst_58 = arith.constant dense<0.000000e+00> : vector<32x256xf32>
    %83 = tpu.matmul %82, %80, %cst_58 {dimension_numbers = #tpu.dot_dimension_numbers<[1], [0], [0], [1], [0, 0, 1, 1], [], []>} : vector<32x32xf32>, vector<32x256xf32>, vector<32x256xf32> -> vector<32x256xf32>
    %84 = arith.addf %76, %83 : vector<32x256xf32>
    %c16_i32_59 = arith.constant 16 : i32
    %85 = tpu.dynamic_rotate %73 by %c16_i32_59 dim 1 : vector<32x256xf32>, i32 -> vector<32x256xf32>
    %c1_60 = arith.constant 1 : index
    %c0_61 = arith.constant 0 : index
    %86 = vector.load %arg10[%c1_60, %c0_61] : memref<9x256xf32, #tpu.memory_space<vmem>>, vector<1x256xf32>
    %87 = vector.broadcast %86 : vector<1x256xf32> to vector<32x256xf32>
    %88 = arith.mulf %85, %87 : vector<32x256xf32>
    %c1_62 = arith.constant 1 : index
    %c0_63 = arith.constant 0 : index
    %c0_64 = arith.constant 0 : index
    %89 = vector.load %arg4[%c1_62, %c0_63, %c0_64] : memref<9x32x32xf32, #tpu.memory_space<vmem>>, vector<1x32x32xf32>
    %90 = vector.shape_cast %89 : vector<1x32x32xf32> to vector<32x32xf32>
    %cst_65 = arith.constant dense<0.000000e+00> : vector<32x256xf32>
    %91 = tpu.matmul %90, %88, %cst_65 {dimension_numbers = #tpu.dot_dimension_numbers<[1], [0], [0], [1], [0, 0, 1, 1], [], []>} : vector<32x32xf32>, vector<32x256xf32>, vector<32x256xf32> -> vector<32x256xf32>
    %92 = arith.addf %84, %91 : vector<32x256xf32>
    %c15_i32_66 = arith.constant 15 : i32
    %93 = tpu.dynamic_rotate %73 by %c15_i32_66 dim 1 : vector<32x256xf32>, i32 -> vector<32x256xf32>
    %c2_67 = arith.constant 2 : index
    %c0_68 = arith.constant 0 : index
    %94 = vector.load %arg10[%c2_67, %c0_68] : memref<9x256xf32, #tpu.memory_space<vmem>>, vector<1x256xf32>
    %95 = vector.broadcast %94 : vector<1x256xf32> to vector<32x256xf32>
    %96 = arith.mulf %93, %95 : vector<32x256xf32>
    %c2_69 = arith.constant 2 : index
    %c0_70 = arith.constant 0 : index
    %c0_71 = arith.constant 0 : index
    %97 = vector.load %arg4[%c2_69, %c0_70, %c0_71] : memref<9x32x32xf32, #tpu.memory_space<vmem>>, vector<1x32x32xf32>
    %98 = vector.shape_cast %97 : vector<1x32x32xf32> to vector<32x32xf32>
    %cst_72 = arith.constant dense<0.000000e+00> : vector<32x256xf32>
    %99 = tpu.matmul %98, %96, %cst_72 {dimension_numbers = #tpu.dot_dimension_numbers<[1], [0], [0], [1], [0, 0, 1, 1], [], []>} : vector<32x32xf32>, vector<32x256xf32>, vector<32x256xf32> -> vector<32x256xf32>
    %100 = arith.addf %92, %99 : vector<32x256xf32>
    %c1_i32_73 = arith.constant 1 : i32
    %101 = tpu.dynamic_rotate %73 by %c1_i32_73 dim 1 : vector<32x256xf32>, i32 -> vector<32x256xf32>
    %c3_74 = arith.constant 3 : index
    %c0_75 = arith.constant 0 : index
    %102 = vector.load %arg10[%c3_74, %c0_75] : memref<9x256xf32, #tpu.memory_space<vmem>>, vector<1x256xf32>
    %103 = vector.broadcast %102 : vector<1x256xf32> to vector<32x256xf32>
    %104 = arith.mulf %101, %103 : vector<32x256xf32>
    %c3_76 = arith.constant 3 : index
    %c0_77 = arith.constant 0 : index
    %c0_78 = arith.constant 0 : index
    %105 = vector.load %arg4[%c3_76, %c0_77, %c0_78] : memref<9x32x32xf32, #tpu.memory_space<vmem>>, vector<1x32x32xf32>
    %106 = vector.shape_cast %105 : vector<1x32x32xf32> to vector<32x32xf32>
    %cst_79 = arith.constant dense<0.000000e+00> : vector<32x256xf32>
    %107 = tpu.matmul %106, %104, %cst_79 {dimension_numbers = #tpu.dot_dimension_numbers<[1], [0], [0], [1], [0, 0, 1, 1], [], []>} : vector<32x32xf32>, vector<32x256xf32>, vector<32x256xf32> -> vector<32x256xf32>
    %108 = arith.addf %100, %107 : vector<32x256xf32>
    %c255_i32_80 = arith.constant 255 : i32
    %109 = tpu.dynamic_rotate %73 by %c255_i32_80 dim 1 : vector<32x256xf32>, i32 -> vector<32x256xf32>
    %c5_81 = arith.constant 5 : index
    %c0_82 = arith.constant 0 : index
    %110 = vector.load %arg10[%c5_81, %c0_82] : memref<9x256xf32, #tpu.memory_space<vmem>>, vector<1x256xf32>
    %111 = vector.broadcast %110 : vector<1x256xf32> to vector<32x256xf32>
    %112 = arith.mulf %109, %111 : vector<32x256xf32>
    %c5_83 = arith.constant 5 : index
    %c0_84 = arith.constant 0 : index
    %c0_85 = arith.constant 0 : index
    %113 = vector.load %arg4[%c5_83, %c0_84, %c0_85] : memref<9x32x32xf32, #tpu.memory_space<vmem>>, vector<1x32x32xf32>
    %114 = vector.shape_cast %113 : vector<1x32x32xf32> to vector<32x32xf32>
    %cst_86 = arith.constant dense<0.000000e+00> : vector<32x256xf32>
    %115 = tpu.matmul %114, %112, %cst_86 {dimension_numbers = #tpu.dot_dimension_numbers<[1], [0], [0], [1], [0, 0, 1, 1], [], []>} : vector<32x32xf32>, vector<32x256xf32>, vector<32x256xf32> -> vector<32x256xf32>
    %116 = arith.addf %108, %115 : vector<32x256xf32>
    %c241_i32_87 = arith.constant 241 : i32
    %117 = tpu.dynamic_rotate %73 by %c241_i32_87 dim 1 : vector<32x256xf32>, i32 -> vector<32x256xf32>
    %c6_88 = arith.constant 6 : index
    %c0_89 = arith.constant 0 : index
    %118 = vector.load %arg10[%c6_88, %c0_89] : memref<9x256xf32, #tpu.memory_space<vmem>>, vector<1x256xf32>
    %119 = vector.broadcast %118 : vector<1x256xf32> to vector<32x256xf32>
    %120 = arith.mulf %117, %119 : vector<32x256xf32>
    %c6_90 = arith.constant 6 : index
    %c0_91 = arith.constant 0 : index
    %c0_92 = arith.constant 0 : index
    %121 = vector.load %arg4[%c6_90, %c0_91, %c0_92] : memref<9x32x32xf32, #tpu.memory_space<vmem>>, vector<1x32x32xf32>
    %122 = vector.shape_cast %121 : vector<1x32x32xf32> to vector<32x32xf32>
    %cst_93 = arith.constant dense<0.000000e+00> : vector<32x256xf32>
    %123 = tpu.matmul %122, %120, %cst_93 {dimension_numbers = #tpu.dot_dimension_numbers<[1], [0], [0], [1], [0, 0, 1, 1], [], []>} : vector<32x32xf32>, vector<32x256xf32>, vector<32x256xf32> -> vector<32x256xf32>
    %124 = arith.addf %116, %123 : vector<32x256xf32>
    %c240_i32_94 = arith.constant 240 : i32
    %125 = tpu.dynamic_rotate %73 by %c240_i32_94 dim 1 : vector<32x256xf32>, i32 -> vector<32x256xf32>
    %c7_95 = arith.constant 7 : index
    %c0_96 = arith.constant 0 : index
    %126 = vector.load %arg10[%c7_95, %c0_96] : memref<9x256xf32, #tpu.memory_space<vmem>>, vector<1x256xf32>
    %127 = vector.broadcast %126 : vector<1x256xf32> to vector<32x256xf32>
    %128 = arith.mulf %125, %127 : vector<32x256xf32>
    %c7_97 = arith.constant 7 : index
    %c0_98 = arith.constant 0 : index
    %c0_99 = arith.constant 0 : index
    %129 = vector.load %arg4[%c7_97, %c0_98, %c0_99] : memref<9x32x32xf32, #tpu.memory_space<vmem>>, vector<1x32x32xf32>
    %130 = vector.shape_cast %129 : vector<1x32x32xf32> to vector<32x32xf32>
    %cst_100 = arith.constant dense<0.000000e+00> : vector<32x256xf32>
    %131 = tpu.matmul %130, %128, %cst_100 {dimension_numbers = #tpu.dot_dimension_numbers<[1], [0], [0], [1], [0, 0, 1, 1], [], []>} : vector<32x32xf32>, vector<32x256xf32>, vector<32x256xf32> -> vector<32x256xf32>
    %132 = arith.addf %124, %131 : vector<32x256xf32>
    %c239_i32_101 = arith.constant 239 : i32
    %133 = tpu.dynamic_rotate %73 by %c239_i32_101 dim 1 : vector<32x256xf32>, i32 -> vector<32x256xf32>
    %c8_102 = arith.constant 8 : index
    %c0_103 = arith.constant 0 : index
    %134 = vector.load %arg10[%c8_102, %c0_103] : memref<9x256xf32, #tpu.memory_space<vmem>>, vector<1x256xf32>
    %135 = vector.broadcast %134 : vector<1x256xf32> to vector<32x256xf32>
    %136 = arith.mulf %133, %135 : vector<32x256xf32>
    %c8_104 = arith.constant 8 : index
    %c0_105 = arith.constant 0 : index
    %c0_106 = arith.constant 0 : index
    %137 = vector.load %arg4[%c8_104, %c0_105, %c0_106] : memref<9x32x32xf32, #tpu.memory_space<vmem>>, vector<1x32x32xf32>
    %138 = vector.shape_cast %137 : vector<1x32x32xf32> to vector<32x32xf32>
    %cst_107 = arith.constant dense<0.000000e+00> : vector<32x256xf32>
    %139 = tpu.matmul %138, %136, %cst_107 {dimension_numbers = #tpu.dot_dimension_numbers<[1], [0], [0], [1], [0, 0, 1, 1], [], []>} : vector<32x32xf32>, vector<32x256xf32>, vector<32x256xf32> -> vector<32x256xf32>
    %140 = arith.addf %132, %139 : vector<32x256xf32>
    %c0_108 = arith.constant 0 : index
    %c0_109 = arith.constant 0 : index
    %141 = vector.load %arg5[%c0_108, %c0_109] : memref<32x1xf32, #tpu.memory_space<vmem>>, vector<32x1xf32>
    %142 = vector.broadcast %141 : vector<32x1xf32> to vector<32x256xf32>
    %143 = arith.addf %140, %142 : vector<32x256xf32>
    %c0_110 = arith.constant 0 : index
    %c0_111 = arith.constant 0 : index
    %144 = vector.load %arg6[%c0_110, %c0_111] : memref<32x2xf32, #tpu.memory_space<vmem>>, vector<32x2xf32>
    %c0_112 = arith.constant 0 : index
    %c0_113 = arith.constant 0 : index
    %145 = vector.load %arg7[%c0_112, %c0_113] : memref<1x2xf32, #tpu.memory_space<vmem>>, vector<1x2xf32>
    %c0_114 = arith.constant 0 : index
    %c0_115 = arith.constant 0 : index
    %146 = vector.load %arg8[%c0_114, %c0_115] : memref<32x2xf32, #tpu.memory_space<vmem>>, vector<32x2xf32>
    %c0_116 = arith.constant 0 : index
    %c0_117 = arith.constant 0 : index
    %147 = vector.load %arg9[%c0_116, %c0_117] : memref<32x1xf32, #tpu.memory_space<vmem>>, vector<32x1xf32>
    %cst_118 = arith.constant dense<0.000000e+00> : vector<32xf32>
    %148 = vector.multi_reduction <add>, %143, %cst_118 [1] : vector<32x256xf32> to vector<32xf32>
    %149 = vector.shape_cast %148 : vector<32xf32> to vector<32x1xf32>
    %cst_119 = arith.constant 2.560000e+02 : f32
    %150 = vector.broadcast %cst_119 : f32 to vector<32x1xf32>
    %151 = arith.divf %149, %150 : vector<32x1xf32>
    %152 = vector.broadcast %151 : vector<32x1xf32> to vector<32x2xf32>
    %153 = arith.mulf %144, %152 : vector<32x2xf32>
    %cst_120 = arith.constant dense<0.000000e+00> : vector<2xf32>
    %154 = vector.multi_reduction <add>, %153, %cst_120 [0] : vector<32x2xf32> to vector<2xf32>
    %155 = vector.shape_cast %154 : vector<2xf32> to vector<1x2xf32>
    %156 = arith.addf %155, %145 : vector<1x2xf32>
    %cst_121 = arith.constant 0.000000e+00 : f32
    %157 = vector.broadcast %cst_121 : f32 to vector<1x2xf32>
    %158 = arith.maximumf %156, %157 : vector<1x2xf32>
    %159 = vector.broadcast %158 : vector<1x2xf32> to vector<32x2xf32>
    %160 = arith.mulf %146, %159 : vector<32x2xf32>
    %cst_122 = arith.constant dense<0.000000e+00> : vector<32xf32>
    %161 = vector.multi_reduction <add>, %160, %cst_122 [1] : vector<32x2xf32> to vector<32xf32>
    %162 = vector.shape_cast %161 : vector<32xf32> to vector<32x1xf32>
    %163 = arith.addf %162, %147 : vector<32x1xf32>
    %164 = arith.negf %163 : vector<32x1xf32>
    %165 = math.exp %164 : vector<32x1xf32>
    %cst_123 = arith.constant 1.000000e+00 : f32
    %166 = vector.broadcast %cst_123 : f32 to vector<32x1xf32>
    %167 = arith.addf %166, %165 : vector<32x1xf32>
    %168 = arith.divf %166, %167 : vector<32x1xf32>
    %169 = vector.broadcast %168 : vector<32x1xf32> to vector<32x256xf32>
    %170 = arith.mulf %143, %169 : vector<32x256xf32>
    %c0_124 = arith.constant 0 : index
    %c0_125 = arith.constant 0 : index
    %c0_126 = arith.constant 0 : index
    %171 = vector.load %arg1[%c0_124, %c0_125, %c0_126] : memref<1x32x256xf32, #tpu.memory_space<vmem>>, vector<1x32x256xf32>
    %172 = vector.shape_cast %171 : vector<1x32x256xf32> to vector<32x256xf32>
    %173 = arith.addf %170, %172 : vector<32x256xf32>
    %c0_127 = arith.constant 0 : index
    %c0_128 = arith.constant 0 : index
    %c0_129 = arith.constant 0 : index
    %174 = vector.load %arg11[%c0_127, %c0_128, %c0_129] : memref<1x32x256xf32, #tpu.memory_space<vmem>>, vector<1x32x256xf32>
    %175 = vector.shape_cast %174 : vector<1x32x256xf32> to vector<32x256xf32>
    %176 = vector.shape_cast %173 : vector<32x256xf32> to vector<1x32x256xf32>
    tpu.vector_store %arg11[%c0_127, %c0_128, %c0_129], %176 {strides = array<i32>} : memref<1x32x256xf32, #tpu.memory_space<vmem>>, vector<1x32x256xf32>,
    return
  }
  func.func @transform_0(%arg0: i32) -> (i32, i32, i32) {
    %c0_i32 = arith.constant 0 : i32
    %c0_i32_0 = arith.constant 0 : i32
    %c0_i32_1 = arith.constant 0 : i32
    return %arg0, %c0_i32, %c0_i32_0 : i32, i32, i32
  }
  func.func @transform_1(%arg0: i32) -> (i32, i32, i32) {
    %c0_i32 = arith.constant 0 : i32
    %c0_i32_0 = arith.constant 0 : i32
    %c0_i32_1 = arith.constant 0 : i32
    %c0_i32_2 = arith.constant 0 : i32
    return %c0_i32, %c0_i32_0, %c0_i32_1 : i32, i32, i32
  }
  func.func @transform_2(%arg0: i32) -> (i32, i32) {
    %c0_i32 = arith.constant 0 : i32
    %c0_i32_0 = arith.constant 0 : i32
    %c0_i32_1 = arith.constant 0 : i32
    return %c0_i32, %c0_i32_0 : i32, i32
  }
  func.func @transform_3(%arg0: i32) -> (i32, i32, i32) {
    %c0_i32 = arith.constant 0 : i32
    %c0_i32_0 = arith.constant 0 : i32
    %c0_i32_1 = arith.constant 0 : i32
    %c0_i32_2 = arith.constant 0 : i32
    return %c0_i32, %c0_i32_0, %c0_i32_1 : i32, i32, i32
  }
  func.func @transform_4(%arg0: i32) -> (i32, i32) {
    %c0_i32 = arith.constant 0 : i32
    %c0_i32_0 = arith.constant 0 : i32
    %c0_i32_1 = arith.constant 0 : i32
    return %c0_i32, %c0_i32_0 : i32, i32
  }
  func.func @transform_5(%arg0: i32) -> (i32, i32) {
    %c0_i32 = arith.constant 0 : i32
    %c0_i32_0 = arith.constant 0 : i32
    %c0_i32_1 = arith.constant 0 : i32
    return %c0_i32, %c0_i32_0 : i32, i32
  }
  func.func @transform_6(%arg0: i32) -> (i32, i32) {
    %c0_i32 = arith.constant 0 : i32
    %c0_i32_0 = arith.constant 0 : i32
    %c0_i32_1 = arith.constant 0 : i32
    return %c0_i32, %c0_i32_0 : i32, i32
  }
  func.func @transform_7(%arg0: i32) -> (i32, i32) {
    %c0_i32 = arith.constant 0 : i32
    %c0_i32_0 = arith.constant 0 : i32
    %c0_i32_1 = arith.constant 0 : i32
    return %c0_i32, %c0_i32_0 : i32, i32
  }
  func.func @transform_8(%arg0: i32) -> (i32, i32) {
    %c0_i32 = arith.constant 0 : i32
    %c0_i32_0 = arith.constant 0 : i32
    %c0_i32_1 = arith.constant 0 : i32
    return %c0_i32, %c0_i32_0 : i32, i32
  }
  func.func @transform_9(%arg0: i32) -> (i32, i32) {
    %c0_i32 = arith.constant 0 : i32
    %c0_i32_0 = arith.constant 0 : i32
    %c0_i32_1 = arith.constant 0 : i32
    return %c0_i32, %c0_i32_0 : i32, i32
  }
  func.func @transform_10(%arg0: i32) -> (i32, i32, i32) {
    %c0_i32 = arith.constant 0 : i32
    %c0_i32_0 = arith.constant 0 : i32
    %c0_i32_1 = arith.constant 0 : i32
    return %arg0, %c0_i32, %c0_i32_0 : i32, i32, i32
  }
}

</mosaic_0001>

<bundles_post_ra>
// kernel: rcab_forward.1
= control target key start
LH: loop header
LB: loop body
LE: loop exit
PB: predicated region body
PF: predicated region fallthrough
CT: control target
= control target key end

     0   :  { %s3082_s13 = smov 0   ;;  %s4617_s0 = inlined_call_operand.vmem [shape: f32[2,32,256], index: 0, kind: input, shape index: {}]   ;;  %s4618_s1 = inlined_call_operand.vmem [shape: f32[9,32,32], index: 1, kind: input, shape index: {}]   ;;  %s4619_s2 = inlined_call_operand.vmem [shape: f32[32,1], index: 2, kind: input, shape index: {}]   ;;  %s4620_s3 = inlined_call_operand.vmem [shape: f32[9,32,32], index: 3, kind: input, shape index: {}]   ;;  %s4621_s4 = inlined_call_operand.vmem [shape: f32[32,1], index: 4, kind: input, shape index: {}]   ;;  %s4622_s5 = inlined_call_operand.vmem [shape: f32[32,2], index: 5, kind: input, shape index: {}]   ;;  %s4623_s6 = inlined_call_operand.vmem [shape: f32[1,2], index: 6, kind: input, shape index: {}]   ;;  %s4624_s7 = inlined_call_operand.vmem [shape: f32[32,2], index: 7, kind: input, shape index: {}]   ;;  %s4625_s8 = inlined_call_operand.vmem [shape: f32[32,1], index: 8, kind: input, shape index: {}]   ;;  %s4626_s9 = inlined_call_operand.vmem [shape: f32[9,256], index: 9, kind: input, shape index: {}]   ;;  %s4627_s10 = inlined_call_operand.vmem [shape: f32[2,32,256], index: 10, kind: output, shape index: {}]  }
   0x1 LB: > { %s2730_s14 = sadd.s32 4294967295, %s3015_s13   ;;  %p2734_p0 = scmp.ge.s32.totalorder %s3015_s13, 1  ;;  %s3015_s13 = sphi %s3082_s13, %s20_s13  }
   0x2   : > { %p312_p1 = scmp.lt.s32.totalorder %s3015_s13, 3 }
   0x4   : > { %p313_p2 = pnand %p2734_p0, %p312_p1 }
   0x6   : > { %316 = sbr.rel (%p313_p2) target bundleno = 1306 (0x51a), region = 60 }
   0xb   : > { %p350_p3 = scmp.lt.s32.totalorder %s2730_s14, 1  ;;  %s3017_s19 = smov 17   ;;  %v389_v11 = vlaneseq  ;;  %vm418_vm0 = vcmask 261120   ;;  %v2739_v12 = vld [vmem:[%s4618_s1 + $0x80] sm:$0xff]  ;;  %v2740_v20 = vld [vmem:[%s4618_s1 + $0x88] sm:$0xff]  ;;  %v2741_v36 = vld [vmem:[%s4618_s1 + $0x90] sm:$0xff] }
   0xc   : > { %s3018_s20 = smov 16   ;;  %s3019_s21 = smov 15   ;;  %v400_v17 = vld [vmem:[%s4626_s9] ss:$8 sm:$0x3]  ;;  %v2742_v48 = vld [vmem:[%s4618_s1 + $0x98] sm:$0xff] }
   0xd   : > { %s4708_s14 = smov (!%p350_p3, %s2730_s14), 1  ;;  %s3020_s22 = smov 1   ;;  %v3229_v15 = vand.u32 127, %v389_v11  ;;  %v3241_v18 = vperm.slane %v400_v17, 0  ;;  %v3243_v19 = vperm.slane %v400_v17, 1  ;;  %v414_v43 = vld [vmem:[%s4618_s1] sm:$0xff] }
   0xe   : > { %s2960_s15 = sshll.u32 %s4708_s14, 6  ;;  %s3021_s23 = smov 127   ;;  %v2759_v45 = vld [vmem:[%s4626_s9 + $0x1] ss:$8 sm:$0x3]  ;;  %v416_v11 = vld [vmem:[%s4618_s1 + $0x10] sm:$0xff] }
   0xf   : > { %s3098_s18 = scalar_lea.vmem %s4617_s0, %s2960_s15  ;;  %s3022_s24 = smov 113   ;;  %4663 = vst [vmem:[#allocation2_spill] sm:$0xff] %v3229_v15  ;;  %vm391_vm1 = vcmp.lt.s32.totalorder %v3229_v15, 17  ;;  %vm575_vm2 = vcmp.lt.s32.totalorder %v3229_v15, 16  ;;  %v3298_v46 = vperm.slane %v2759_v45, 0  ;;  %v3300_v47 = vperm.slane %v2759_v45, 1 }
  0x10   : > { %v3101_v0 = vld [vmem:[%s3098_s18 + $0x30] sm:$0xff]  ;;  %v3104_v1 = vld [vmem:[%s3098_s18 + $0x20] sm:$0xff]  ;;  %v3111_v2 = vld [vmem:[%s3098_s18 + $0x38] sm:$0xff]  ;;  %4664 = vst [vmem:[#allocation3_spill] sm:$0xff] %v3241_v18  ;;  %s3023_s11 = smov 112   ;;  %s3024_s16 = smov 111  }
  0x11   : > { %379 = vrot.lane.b32.xlu0 %v3101_v0, %s3017_s19  ;;  %377 = vrot.lane.b32.xlu1 %v3104_v1, %s3017_s19  ;;  %v3114_v3 = vld [vmem:[%s3098_s18 + $0x10] sm:$0xff]  ;;  %v3119_v4 = vld [vmem:[%s3098_s18 + $0x28] sm:$0xff]  ;;  %4665 = vst [vmem:[#allocation4_spill] sm:$0xff] %v3243_v19  ;;  %vm698_vm3 = vcmp.lt.s32.totalorder %v3229_v15, 15  ;;  %vm821_vm4 = vcmp.lt.s32.totalorder %v3229_v15, 1  ;;  %vm944_vm5 = vcmp.lt.s32.totalorder %v3229_v15, 127  ;;  %s4590_s30 = scalar_lea.vmem %s4627_s10, %s2960_s15 }
  0x12   : > { %513 = vmatpush.msra.mxu2 %v3101_v0  ;;  %542 = vmatpush.msra.mxu3 %v3111_v2  ;;  %v3126_v5 = vld [vmem:[%s3098_s18 + $0x18] sm:$0xff]  ;;  %v3131_v6 = vld [vmem:[%s3098_s18 + $0x8] sm:$0xff]  ;;  %v3134_v7 = vld [vmem:[%s3098_s18] sm:$0xff]  ;;  %4666 = vst [vmem:[#allocation5_spill] sm:$0xff] %v3298_v46  ;;  %vm1067_vm6 = vcmp.lt.s32.totalorder %v3229_v15, 113  ;;  %vm1190_vm7 = vcmp.lt.s32.totalorder %v3229_v15, 112 }
  0x13   : > { %375 = vrot.lane.b32.xlu2 %v3114_v3, %s3017_s19  ;;  %4667 = vst [vmem:[#allocation6_spill] sm:$0xff] %v3300_v47  ;;  %v415_v57 = vld [vmem:[%s4618_s1 + $0x8] sm:$0xff]  ;;  %vm1313_vm8 = vcmp.lt.s32.totalorder %v3229_v15, 111  ;;  %vm2518_vm10 = vcmask 15360  }
  0x14   : > { %514 = vmatpush.msra.mxu2 %v3104_v1  ;;  %543 = vmatpush.msra.mxu3 %v3119_v4 }
  0x16   : > { %515 = vmatpush.msra.mxu2 %v3114_v3  ;;  %544 = vmatpush.msra.mxu3 %v3126_v5 }
  0x18   : > { %545 = vmatpush.msra.mxu3 %v3131_v6  ;;  %516 = vmatpush.msra.mxu2 %v3134_v7 }
  0x19   : > { %387 = vrot.lane.b32.xlu0 %v3111_v2, %s3017_s19  ;;  %385 = vrot.lane.b32.xlu1 %v3119_v4, %s3017_s19 }
  0x1a   : > { %2751 = vmatmul.msk.f32.vlgmr.msra.gmra.mxu2 %vm418_vm0, %v2739_v12  ;;  %2755 = vmatmul.msk.f32.vlgmr.msra.gmra.mxu3 %vm418_vm0, %v2739_v12 }
  0x1b   : > { %383 = vrot.lane.b32.xlu2 %v3126_v5, %s3017_s19 }
  0x21   : > { %381 = vrot.lane.b32.xlu1 %v3131_v6, %s3017_s19  ;;  %373 = vrot.lane.b32.xlu0 %v3134_v7, %s3017_s19 }
  0x22   : > { %2752 = vmatmul.msk.f32.gmra.mxu2 %vm418_vm0, %v2740_v20  ;;  %2756 = vmatmul.msk.f32.gmra.mxu3 %vm418_vm0, %v2740_v20 }
  0x23   : > { %565 = vrot.lane.b32.xlu2 %v3101_v0, %s3018_s20 }
  0x29   : > { %563 = vrot.lane.b32.xlu1 %v3104_v1, %s3018_s20  ;;  %573 = vrot.lane.b32.xlu0 %v3111_v2, %s3018_s20 }
  0x2a   : > { %2753 = vmatmul.msk.f32.gmra.mxu2 %vm418_vm0, %v2741_v36  ;;  %2757 = vmatmul.msk.f32.gmra.mxu3 %vm418_vm0, %v2741_v36 }
  0x2b   : > { %571 = vrot.lane.b32.xlu2 %v3119_v4, %s3018_s20 }
  0x31   : > { %569 = vrot.lane.b32.xlu1 %v3126_v5, %s3018_s20  ;;  %561 = vrot.lane.b32.xlu0 %v3114_v3, %s3018_s20 }
  0x32   : > { %2754 = vmatmul.msk.f32.gmra.mxu2 %vm418_vm0, %v2742_v48  ;;  %2758 = vmatmul.msk.f32.gmra.mxu3 %vm418_vm0, %v2742_v48 }
  0x33   : > { %559 = vrot.lane.b32.xlu2 %v3134_v7, %s3018_s20 }
  0x39   : > { %688 = vrot.lane.b32.xlu1 %v3101_v0, %s3019_s21  ;;  %567 = vrot.lane.b32.xlu0 %v3131_v6, %s3018_s20 }
  0x3b   : > { %696 = vrot.lane.b32.xlu2 %v3111_v2, %s3019_s21 }
  0x41   : > { %694 = vrot.lane.b32.xlu1 %v3119_v4, %s3019_s21  ;;  %686 = vrot.lane.b32.xlu0 %v3104_v1, %s3019_s21 }
  0x43   : > { %684 = vrot.lane.b32.xlu2 %v3114_v3, %s3019_s21 }
  0x49   : > { %682 = vrot.lane.b32.xlu1 %v3134_v7, %s3019_s21  ;;  %692 = vrot.lane.b32.xlu0 %v3126_v5, %s3019_s21 }
  0x4b   : > { %690 = vrot.lane.b32.xlu2 %v3131_v6, %s3019_s21 }
  0x51   : > { %819 = vrot.lane.b32.xlu1 %v3111_v2, %s3020_s22  ;;  %811 = vrot.lane.b32.xlu0 %v3101_v0, %s3020_s22 }
  0x53   : > { %809 = vrot.lane.b32.xlu2 %v3104_v1, %s3020_s22 }
  0x59   : > { %807 = vrot.lane.b32.xlu1 %v3114_v3, %s3020_s22  ;;  %817 = vrot.lane.b32.xlu0 %v3119_v4, %s3020_s22 }
  0x5b   : > { %815 = vrot.lane.b32.xlu2 %v3126_v5, %s3020_s22 }
  0x61   : > { %813 = vrot.lane.b32.xlu1 %v3131_v6, %s3020_s22  ;;  %805 = vrot.lane.b32.xlu0 %v3134_v7, %s3020_s22 }
  0x63   : > { %934 = vrot.lane.b32.xlu2 %v3101_v0, %s3021_s23 }
  0x69   : > { %932 = vrot.lane.b32.xlu1 %v3104_v1, %s3021_s23  ;;  %942 = vrot.lane.b32.xlu0 %v3111_v2, %s3021_s23 }
  0x6b   : > { %940 = vrot.lane.b32.xlu2 %v3119_v4, %s3021_s23 }
  0x6d   : > { %v376_v8 = vpop.permute.xlu2 %375 }
  0x71   : > { %938 = vrot.lane.b32.xlu1 %v3126_v5, %s3021_s23  ;;  %930 = vrot.lane.b32.xlu0 %v3114_v3, %s3021_s23 }
  0x73   : > { %928 = vrot.lane.b32.xlu2 %v3134_v7, %s3021_s23 }
  0x75   : > { %v384_v9 = vpop.permute.xlu2 %383 }
  0x76   : > { %v393_v30 = vsel %vm391_vm1, %v376_v8, %v384_v9  ;;  %v397_v31 = vsel %vm391_vm1, %v384_v9, %v376_v8 }
  0x77   : > { %v408_v34 = vmul.f32 %v3241_v18, %v397_v31  ;;  %v409_v35 = vmul.f32 %v3243_v19, %v393_v30 }
  0x79   : > { %1057 = vrot.lane.b32.xlu1 %v3101_v0, %s3022_s24  ;;  %936 = vrot.lane.b32.xlu0 %v3131_v6, %s3021_s23 }
  0x7b   : > { %1065 = vrot.lane.b32.xlu2 %v3111_v2, %s3022_s24 }
  0x7d   : > { %v3216_v10 = vpop.permute.xlu2 %565 }
  0x81   : > { %1063 = vrot.lane.b32.xlu1 %v3119_v4, %s3022_s24  ;;  %1055 = vrot.lane.b32.xlu0 %v3104_v1, %s3022_s24 }
  0x83   : > { %v380_v13 = vpop.permute.xlu0 %379  ;;  %v378_v14 = vpop.permute.xlu1 %377  ;;  %1053 = vrot.lane.b32.xlu2 %v3114_v3, %s3022_s24 }
  0x85   : > { %v3231_v16 = vpop.permute.xlu2 %571 }
  0x89   : > { %1051 = vrot.lane.b32.xlu1 %v3134_v7, %s3022_s24  ;;  %1061 = vrot.lane.b32.xlu0 %v3126_v5, %s3022_s24 }
  0x8b   : > { %v388_v21 = vpop.permute.xlu0 %387  ;;  %v386_v22 = vpop.permute.xlu1 %385  ;;  %1059 = vrot.lane.b32.xlu2 %v3131_v6, %s3022_s24 }
  0x8c   : > { %v394_v23 = vsel %vm391_vm1, %v378_v14, %v386_v22  ;;  %v398_v24 = vsel %vm391_vm1, %v386_v22, %v378_v14  ;;  %v399_v25 = vsel %vm391_vm1, %v388_v21, %v380_v13  ;;  %v395_v26 = vsel %vm391_vm1, %v380_v13, %v388_v21  ;;  %v2772_v13 = vld [vmem:[%s4626_s9 + $0x2] ss:$8 sm:$0x3] }
  0x8d   : > { %v412_v27 = vmul.f32 %v3241_v18, %v399_v25  ;;  %v413_v28 = vmul.f32 %v3243_v19, %v395_v26  ;;  %v3262_v29 = vpop.permute.xlu2 %559  ;;  %v410_v32 = vmul.f32 %v3241_v18, %v398_v24  ;;  %v411_v33 = vmul.f32 %v3243_v19, %v394_v23  ;;  %v417_v24 = vld [vmem:[%s4618_s1 + $0x18] sm:$0xff] }
  0x8e   : > { %v3359_v14 = vperm.slane %v2772_v13, 0 }
  0x8f   : > { %443 = vmatpush.msra.mxu0 %v412_v27  ;;  %472 = vmatpush.msra.mxu1 %v413_v28 }
  0x90   : > { %4669 = vst [vmem:[#allocation8_spill] sm:$0xff] %v3359_v14 }
  0x91   : > { %444 = vmatpush.msra.mxu0 %v410_v32  ;;  %473 = vmatpush.msra.mxu1 %v411_v33 }
  0x92   : > { %1188 = vrot.lane.b32.xlu1 %v3111_v2, %s3023_s11  ;;  %1180 = vrot.lane.b32.xlu0 %v3101_v0, %s3023_s11 }
  0x93   : > { %445 = vmatpush.msra.mxu0 %v408_v34  ;;  %474 = vmatpush.msra.mxu1 %v409_v35  ;;  %v382_v37 = vpop.permute.xlu1 %381  ;;  %v374_v38 = vpop.permute.xlu0 %373 }
  0x94   : > { %v392_v39 = vsel %vm391_vm1, %v374_v38, %v382_v37  ;;  %v396_v40 = vsel %vm391_vm1, %v382_v37, %v374_v38  ;;  %1178 = vrot.lane.b32.xlu2 %v3104_v1, %s3023_s11 }
  0x95   : > { %v406_v41 = vmul.f32 %v3241_v18, %v396_v40  ;;  %v407_v42 = vmul.f32 %v3243_v19, %v392_v39  ;;  %v697_v44 = vpop.permute.xlu2 %696  ;;  %v2761_v39 = vld [vmem:[%s4618_s1 + $0x28] sm:$0xff] }
  0x97   : > { %446 = vmatpush.msra.mxu0 %v406_v41  ;;  %475 = vmatpush.msra.mxu1 %v407_v42  ;;  %v2785_v42 = vld [vmem:[%s4626_s9 + $0x3] ss:$8 sm:$0x3] }
  0x98   : > { %2743 = vmatmul.msk.f32.vlgmr.msra.gmra.mxu0 %vm418_vm0, %v414_v43  ;;  %2747 = vmatmul.msk.f32.vlgmr.msra.gmra.mxu1 %vm418_vm0, %v414_v43  ;;  %v2773_v43 = vld [vmem:[%s4618_s1 + $0x40] sm:$0xff]  ;;  %v3435_v45 = vperm.slane %v2785_v42, 1 }
  0x9a   : > { %1176 = vrot.lane.b32.xlu1 %v3114_v3, %s3023_s11  ;;  %1186 = vrot.lane.b32.xlu0 %v3119_v4, %s3023_s11  ;;  %4671 = vst [vmem:[#allocation10_spill] sm:$0xff] %v3435_v45 }
  0x9b   : > { %v564_v49 = vpop.permute.xlu1 %563  ;;  %v574_v50 = vpop.permute.xlu0 %573 }
  0x9c   : > { %v579_v51 = vsel %vm575_vm2, %v3216_v10, %v574_v50  ;;  %v583_v52 = vsel %vm575_vm2, %v574_v50, %v3216_v10  ;;  %v578_v53 = vsel %vm575_vm2, %v564_v49, %v3231_v16  ;;  %v582_v54 = vsel %vm575_vm2, %v3231_v16, %v564_v49  ;;  %1184 = vrot.lane.b32.xlu2 %v3126_v5, %s3023_s11 }
  0x9d   : > { %v597_v55 = vmul.f32 %v3298_v46, %v583_v52  ;;  %v598_v56 = vmul.f32 %v3300_v47, %v579_v51  ;;  %v595_v58 = vmul.f32 %v3298_v46, %v582_v54  ;;  %v596_v59 = vmul.f32 %v3300_v47, %v578_v53  ;;  %v3330_v60 = vpop.permute.xlu2 %684 }
  0x9f   : > { %628 = vmatpush.msrb.mxu0 %v597_v55  ;;  %657 = vmatpush.msrb.mxu1 %v598_v56  ;;  %v2762_v55 = vld [vmem:[%s4618_s1 + $0x30] sm:$0xff]  ;;  %v2774_v56 = vld [vmem:[%s4618_s1 + $0x48] sm:$0xff] }
  0xa0   : > { %2744 = vmatmul.msk.f32.gmra.mxu0 %vm418_vm0, %v415_v57  ;;  %2748 = vmatmul.msk.f32.gmra.mxu1 %vm418_vm0, %v415_v57 }
  0xa1   : > { %629 = vmatpush.msrb.mxu0 %v595_v58  ;;  %658 = vmatpush.msrb.mxu1 %v596_v59 }
  0xa2   : > { %1182 = vrot.lane.b32.xlu1 %v3131_v6, %s3023_s11  ;;  %1174 = vrot.lane.b32.xlu0 %v3134_v7, %s3023_s11 }
  0xa3   : > { %v570_v61 = vpop.permute.xlu1 %569  ;;  %v562_v62 = vpop.permute.xlu0 %561 }
  0xa4   : > { %v577_v63 = vsel %vm575_vm2, %v562_v62, %v570_v61  ;;  %v581_v8 = vsel %vm575_vm2, %v570_v61, %v562_v62  ;;  %1303 = vrot.lane.b32.xlu2 %v3101_v0, %s3024_s16  ;;  %v3357_v0 = vperm.slane %v2772_v13, 1  ;;  %v2775_v13 = vld [vmem:[%s4618_s1 + $0x50] sm:$0xff] }
  0xa5   : > { %v593_v9 = vmul.f32 %v3298_v46, %v581_v8  ;;  %v594_v10 = vmul.f32 %v3300_v47, %v577_v63  ;;  %v691_v12 = vpop.permute.xlu2 %690 }
  0xa6   : > { %4668 = vst [vmem:[#allocation7_spill] sm:$0xff] %v3357_v0 }
  0xa7   : > { %630 = vmatpush.msrb.mxu0 %v593_v9  ;;  %659 = vmatpush.msrb.mxu1 %v594_v10 }
  0xa8   : > { %2745 = vmatmul.msk.f32.gmra.mxu0 %vm418_vm0, %v416_v11  ;;  %2749 = vmatmul.msk.f32.gmra.mxu1 %vm418_vm0, %v416_v11 }
  0xaa   : > { %1301 = vrot.lane.b32.xlu1 %v3104_v1, %s3024_s16  ;;  %1311 = vrot.lane.b32.xlu0 %v3111_v2, %s3024_s16 }
  0xab   : > { %v689_v16 = vpop.permute.xlu1 %688  ;;  %v568_v17 = vpop.permute.xlu0 %567 }
  0xac   : > { %v576_v20 = vsel %vm575_vm2, %v3262_v29, %v568_v17  ;;  %v580_v21 = vsel %vm575_vm2, %v568_v17, %v3262_v29  ;;  %v702_v22 = vsel %vm698_vm3, %v689_v16, %v697_v44  ;;  %v706_v23 = vsel %vm698_vm3, %v697_v44, %v689_v16  ;;  %1309 = vrot.lane.b32.xlu2 %v3119_v4, %s3024_s16 }
  0xad   : > { %v591_v1 = vmul.f32 %v3298_v46, %v580_v21  ;;  %v592_v2 = vmul.f32 %v3300_v47, %v576_v20  ;;  %v721_v25 = vmul.f32 %v3357_v0, %v702_v22  ;;  %v720_v26 = vmul.f32 %v3359_v14, %v706_v23  ;;  %v3384_v27 = vpop.permute.xlu2 %809 }
  0xae   : > { %v3433_v44 = vperm.slane %v2785_v42, 0  ;;  %v2811_v42 = vld [vmem:[%s4626_s9 + $0x6] ss:$8 sm:$0x3] }
  0xaf   : > { %631 = vmatpush.msrb.mxu0 %v591_v1  ;;  %660 = vmatpush.msrb.mxu1 %v592_v2  ;;  %v2786_v1 = vld [vmem:[%s4618_s1 + $0x60] sm:$0xff] }
  0xb0   : > { %2746 = vmatmul.msk.f32.gmra.mxu0 %vm418_vm0, %v417_v24  ;;  %2750 = vmatmul.msk.f32.gmra.mxu1 %vm418_vm0, %v417_v24  ;;  %4670 = vst [vmem:[#allocation9_spill] sm:$0xff] %v3433_v44  ;;  %v2798_v2 = vld [vmem:[%s4626_s9 + $0x5] ss:$8 sm:$0x3] }
  0xb1   : > { %780 = vmatpush.msrb.mxu3 %v721_v25  ;;  %751 = vmatpush.msrb.mxu2 %v720_v26  ;;  %v2776_v25 = vld [vmem:[%s4618_s1 + $0x58] sm:$0xff]  ;;  %v3497_v26 = vperm.slane %v2798_v2, 0 }
  0xb2   : > { %1307 = vrot.lane.b32.xlu1 %v3126_v5, %s3024_s16  ;;  %1299 = vrot.lane.b32.xlu0 %v3114_v3, %s3024_s16  ;;  %v2760_v5 = vld [vmem:[%s4618_s1 + $0x20] sm:$0xff] }
  0xb3   : > { %v695_v4 = vpop.permute.xlu1 %694  ;;  %v687_v28 = vpop.permute.xlu0 %686  ;;  %4672 = vst [vmem:[#allocation11_spill] sm:$0xff] %v3497_v26 }
  0xb4   : > { %v701_v29 = vsel %vm698_vm3, %v687_v28, %v695_v4  ;;  %v705_v30 = vsel %vm698_vm3, %v695_v4, %v687_v28  ;;  %1297 = vrot.lane.b32.xlu2 %v3134_v7, %s3024_s16 }
  0xb5   : > { %v718_v31 = vmul.f32 %v3359_v14, %v705_v30  ;;  %v719_v32 = vmul.f32 %v3357_v0, %v701_v29  ;;  %v816_v3 = vpop.permute.xlu2 %815 }
  0xb7   : > { %752 = vmatpush.msrb.mxu2 %v718_v31  ;;  %781 = vmatpush.msrb.mxu3 %v719_v32 }
  0xb8   : > { %2764 = vmatmul.msk.f32.vlgmr.msrb.gmra.mxu0 %vm418_vm0, %v2760_v5  ;;  %2768 = vmatmul.msk.f32.vlgmr.msrb.gmra.mxu1 %vm418_vm0, %v2760_v5 }
  0xba   : > { %1305 = vrot.lane.b32.xlu0 %v3131_v6, %s3024_s16 }
  0xbb   : > { %v683_v33 = vpop.permute.xlu1 %682  ;;  %v693_v7 = vpop.permute.xlu0 %692 }
  0xbc   : > { %v700_v34 = vsel %vm698_vm3, %v3330_v60, %v693_v7  ;;  %v704_v35 = vsel %vm698_vm3, %v693_v7, %v3330_v60  ;;  %v699_v36 = vsel %vm698_vm3, %v683_v33, %v691_v12  ;;  %v703_v37 = vsel %vm698_vm3, %v691_v12, %v683_v33  ;;  %v2763_v12 = vld [vmem:[%s4618_s1 + $0x38] sm:$0xff] }
  0xbd   : > { %v716_v38 = vmul.f32 %v3359_v14, %v704_v35  ;;  %v717_v6 = vmul.f32 %v3357_v0, %v700_v34  ;;  %v714_v40 = vmul.f32 %v3359_v14, %v703_v37  ;;  %v715_v41 = vmul.f32 %v3357_v0, %v699_v36  ;;  %v935_v48 = vpop.permute.xlu2 %934  ;;  %v2787_v34 = vld [vmem:[%s4618_s1 + $0x68] sm:$0xff] }
  0xbf   : > { %753 = vmatpush.msrb.mxu2 %v716_v38  ;;  %782 = vmatpush.msrb.mxu3 %v717_v6 }
  0xc0   : > { %2765 = vmatmul.msk.f32.gmra.mxu0 %vm418_vm0, %v2761_v39  ;;  %2769 = vmatmul.msk.f32.gmra.mxu1 %vm418_vm0, %v2761_v39 }
  0xc1   : > { %754 = vmatpush.msrb.mxu2 %v714_v40  ;;  %783 = vmatpush.msrb.mxu3 %v715_v41  ;;  %v2788_v41 = vld [vmem:[%s4618_s1 + $0x70] sm:$0xff] }
  0xc2   : > { %2777 = vmatmul.msk.f32.vlgmr.msrb.gmra.mxu2 %vm418_vm0, %v2773_v43  ;;  %2781 = vmatmul.msk.f32.vlgmr.msrb.gmra.mxu3 %vm418_vm0, %v2773_v43  ;;  %v3535_v43 = vperm.slane %v2811_v42, 0 }
  0xc3   : > { %v820_v49 = vpop.permute.xlu1 %819  ;;  %v812_v50 = vpop.permute.xlu0 %811 }
  0xc4   : > { %v825_v51 = vsel %vm821_vm4, %v812_v50, %v820_v49  ;;  %v829_v52 = vsel %vm821_vm4, %v820_v49, %v812_v50  ;;  %4674 = vst [vmem:[#allocation13_spill] sm:$0xff] %v3535_v43 }
  0xc5   : > { %v843_v53 = vmul.f32 %v3433_v44, %v829_v52  ;;  %v844_v54 = vmul.f32 %v3435_v45, %v825_v51  ;;  %v941_v63 = vpop.permute.xlu2 %940 }
  0xc7   : > { %874 = vmatpush.msra.mxu0 %v843_v53  ;;  %903 = vmatpush.msra.mxu1 %v844_v54 }
  0xc8   : > { %2766 = vmatmul.msk.f32.gmra.mxu0 %vm418_vm0, %v2762_v55  ;;  %2770 = vmatmul.msk.f32.gmra.mxu1 %vm418_vm0, %v2762_v55 }
  0xca   : > { %2778 = vmatmul.msk.f32.gmra.mxu2 %vm418_vm0, %v2774_v56  ;;  %2782 = vmatmul.msk.f32.gmra.mxu3 %vm418_vm0, %v2774_v56 }
  0xcb   : > { %v808_v57 = vpop.permute.xlu1 %807  ;;  %v818_v58 = vpop.permute.xlu0 %817 }
  0xcc   : > { %v824_v59 = vsel %vm821_vm4, %v3384_v27, %v818_v58  ;;  %v828_v60 = vsel %vm821_vm4, %v818_v58, %v3384_v27  ;;  %v823_v61 = vsel %vm821_vm4, %v808_v57, %v816_v3  ;;  %v827_v62 = vsel %vm821_vm4, %v816_v3, %v808_v57  ;;  %v2789_v58 = vld [vmem:[%s4618_s1 + $0x78] sm:$0xff] }
  0xcd   : > { %v841_v8 = vmul.f32 %v3433_v44, %v828_v60  ;;  %v842_v9 = vmul.f32 %v3435_v45, %v824_v59  ;;  %v839_v10 = vmul.f32 %v3433_v44, %v827_v62  ;;  %v840_v11 = vmul.f32 %v3435_v45, %v823_v61  ;;  %v929_v24 = vpop.permute.xlu2 %928  ;;  %v2799_v61 = vld [vmem:[%s4618_s1 + $0xa0] sm:$0xff] }
  0xce   : > { %v3499_v27 = vperm.slane %v2798_v2, 1 }
  0xcf   : > { %875 = vmatpush.msra.mxu0 %v841_v8  ;;  %904 = vmatpush.msra.mxu1 %v842_v9 }
  0xd0   : > { %2767 = vmatmul.msk.f32.gmra.mxu0 %vm418_vm0, %v2763_v12  ;;  %2771 = vmatmul.msk.f32.gmra.mxu1 %vm418_vm0, %v2763_v12  ;;  %4673 = vst [vmem:[#allocation12_spill] sm:$0xff] %v3499_v27 }
  0xd1   : > { %876 = vmatpush.msra.mxu0 %v839_v10  ;;  %905 = vmatpush.msra.mxu1 %v840_v11 }
  0xd2   : > { %2779 = vmatmul.msk.f32.gmra.mxu2 %vm418_vm0, %v2775_v13  ;;  %2783 = vmatmul.msk.f32.gmra.mxu3 %vm418_vm0, %v2775_v13  ;;  %v2800_v13 = vld [vmem:[%s4618_s1 + $0xa8] sm:$0xff] }
  0xd3   : > { %v814_v16 = vpop.permute.xlu1 %813  ;;  %v806_v17 = vpop.permute.xlu0 %805 }
  0xd4   : > { %v822_v20 = vsel %vm821_vm4, %v806_v17, %v814_v16  ;;  %v826_v21 = vsel %vm821_vm4, %v814_v16, %v806_v17 }
  0xd5   : > { %v837_v22 = vmul.f32 %v3433_v44, %v826_v21  ;;  %v838_v23 = vmul.f32 %v3435_v45, %v822_v20  ;;  %v1066_v35 = vpop.permute.xlu2 %1065 }
  0xd7   : > { %877 = vmatpush.msra.mxu0 %v837_v22  ;;  %906 = vmatpush.msra.mxu1 %v838_v23 }
  0xd8   : > { %2790 = vmatmul.msk.f32.vlgmr.msra.gmra.mxu0 %vm418_vm0, %v2786_v1  ;;  %2794 = vmatmul.msk.f32.vlgmr.msra.gmra.mxu1 %vm418_vm0, %v2786_v1 }
  0xda   : > { %2780 = vmatmul.msk.f32.gmra.mxu2 %vm418_vm0, %v2776_v25  ;;  %2784 = vmatmul.msk.f32.gmra.mxu3 %vm418_vm0, %v2776_v25 }
  0xdb   : > { %v933_v4 = vpop.permute.xlu1 %932  ;;  %v943_v28 = vpop.permute.xlu0 %942 }
  0xdc   : > { %v948_v29 = vsel %vm944_vm5, %v935_v48, %v943_v28  ;;  %v952_v30 = vsel %vm944_vm5, %v943_v28, %v935_v48  ;;  %v947_v31 = vsel %vm944_vm5, %v933_v4, %v941_v63  ;;  %v951_v32 = vsel %vm944_vm5, %v941_v63, %v933_v4  ;;  %v2801_v28 = vld [vmem:[%s4618_s1 + $0xb0] sm:$0xff] }
  0xdd   : > { %v966_v5 = vmul.f32 %v3497_v26, %v948_v29  ;;  %v967_v3 = vmul.f32 %v3499_v27, %v952_v30  ;;  %v964_v33 = vmul.f32 %v3497_v26, %v947_v31  ;;  %v965_v7 = vmul.f32 %v3499_v27, %v951_v32  ;;  %v1054_v49 = vpop.permute.xlu2 %1053  ;;  %v2824_v29 = vld [vmem:[%s4626_s9 + $0x7] ss:$8 sm:$0x3] }
  0xde   : > { %v3537_v48 = vperm.slane %v2811_v42, 1  ;;  %v2812_v30 = vld [vmem:[%s4618_s1 + $0xc0] sm:$0xff]  ;;  %v3596_v31 = vperm.slane %v2824_v29, 0  ;;  %v3598_v32 = vperm.slane %v2824_v29, 1 }
  0xdf   : > { %997 = vmatpush.msra.mxu2 %v966_v5  ;;  %1026 = vmatpush.msra.mxu3 %v967_v3 }
  0xe0   : > { %2791 = vmatmul.msk.f32.gmra.mxu0 %vm418_vm0, %v2787_v34  ;;  %2795 = vmatmul.msk.f32.gmra.mxu1 %vm418_vm0, %v2787_v34  ;;  %4675 = vst [vmem:[#allocation14_spill] sm:$0xff] %v3537_v48 }
  0xe1   : > { %998 = vmatpush.msra.mxu2 %v964_v33  ;;  %1027 = vmatpush.msra.mxu3 %v965_v7  ;;  %4676 = vst [vmem:[#allocation15_spill] sm:$0xff] %v3596_v31 }
  0xe2   : > { %4677 = vst [vmem:[#allocation16_spill] sm:$0xff] %v3598_v32 }
  0xe3   : > { %v939_v36 = vpop.permute.xlu1 %938  ;;  %v931_v37 = vpop.permute.xlu0 %930 }
  0xe4   : > { %v946_v38 = vsel %vm944_vm5, %v931_v37, %v939_v36  ;;  %v950_v6 = vsel %vm944_vm5, %v939_v36, %v931_v37  ;;  %v2802_v36 = vld [vmem:[%s4618_s1 + $0xb8] sm:$0xff] }
  0xe5   : > { %v962_v39 = vmul.f32 %v3497_v26, %v946_v38  ;;  %v963_v40 = vmul.f32 %v3499_v27, %v950_v6  ;;  %v1060_v10 = vpop.permute.xlu2 %1059  ;;  %v2813_v38 = vld [vmem:[%s4618_s1 + $0xc8] sm:$0xff] }
  0xe7   : > { %999 = vmatpush.msra.mxu2 %v962_v39  ;;  %1028 = vmatpush.msra.mxu3 %v963_v40 }
  0xe8   : > { %2792 = vmatmul.msk.f32.gmra.mxu0 %vm418_vm0, %v2788_v41  ;;  %2796 = vmatmul.msk.f32.gmra.mxu1 %vm418_vm0, %v2788_v41 }
  0xeb   : > { %v1058_v50 = vpop.permute.xlu1 %1057  ;;  %v937_v51 = vpop.permute.xlu0 %936 }
  0xec   : > { %v945_v52 = vsel %vm944_vm5, %v929_v24, %v937_v51  ;;  %v949_v53 = vsel %vm944_vm5, %v937_v51, %v929_v24  ;;  %v1071_v54 = vsel %vm1067_vm6, %v1058_v50, %v1066_v35  ;;  %v1075_v55 = vsel %vm1067_vm6, %v1066_v35, %v1058_v50  ;;  %v1423_v51 = vld [vmem:[%s4619_s2 + $0x18] sm:$0xff] }
  0xed   : > { %v960_v56 = vmul.f32 %v3497_v26, %v945_v52  ;;  %v961_v57 = vmul.f32 %v3499_v27, %v949_v53  ;;  %v1089_v59 = vmul.f32 %v3535_v43, %v1071_v54  ;;  %v1090_v60 = vmul.f32 %v3537_v48, %v1075_v55 }
  0xee   : > { %v1179_v1 = vpop.permute.xlu2 %1178  ;;  %v3025_v50 = vmov 0  }
  0xef   : > { %1000 = vmatpush.msra.mxu2 %v960_v56  ;;  %1029 = vmatpush.msra.mxu3 %v961_v57  ;;  %v2814_v56 = vld [vmem:[%s4618_s1 + $0xd0] sm:$0xff] }
  0xf0   : > { %2793 = vmatmul.msk.f32.gmra.mxu0 %vm418_vm0, %v2789_v58  ;;  %2797 = vmatmul.msk.f32.gmra.mxu1 %vm418_vm0, %v2789_v58  ;;  %v1420_v58 = vld [vmem:[%s4619_s2] sm:$0xff] }
  0xf1   : > { %2803 = vmatmul.msk.f32.vlgmr.msra.gmra.mxu2 %vm418_vm0, %v2799_v61  ;;  %2807 = vmatmul.msk.f32.vlgmr.msra.gmra.mxu3 %vm418_vm0, %v2799_v61 }
  0xf2   : > { %1120 = vmatpush.msrb.mxu0 %v1089_v59  ;;  %1149 = vmatpush.msrb.mxu1 %v1090_v60 }
  0xf3   : > { %v1064_v62 = vpop.permute.xlu1 %1063  ;;  %v1056_v63 = vpop.permute.xlu0 %1055  ;;  %2980 = vset.pattern.permute.xlu1 %v3025_v50  ;;  %2982 = vset.pattern.permute.xlu0 %v3025_v50 }
  0xf4   : > { %v1070_v8 = vsel %vm1067_vm6, %v1056_v63, %v1064_v62  ;;  %v1074_v9 = vsel %vm1067_vm6, %v1064_v62, %v1056_v63  ;;  %1441 = vperm.xlu1 %2980, %v1423_v51   ;;  %2981 = vset.pattern.permute.xlu2 %v3025_v50 }
  0xf5   : > { %v1087_v11 = vmul.f32 %v3535_v43, %v1070_v8  ;;  %v1088_v12 = vmul.f32 %v3537_v48, %v1074_v9 }
  0xf6   : > { %v1185_v37 = vpop.permute.xlu2 %1184 }
  0xf7   : > { %1121 = vmatpush.msrb.mxu0 %v1087_v11  ;;  %1150 = vmatpush.msrb.mxu1 %v1088_v12  ;;  %v2825_v11 = vld [vmem:[%s4618_s1 + $0xe0] sm:$0xff]  ;;  %v2837_v12 = vld [vmem:[%s4626_s9 + $0x10] ss:$8 sm:$0x3] }
  0xf9   : > { %2804 = vmatmul.msk.f32.gmra.mxu2 %vm418_vm0, %v2800_v13  ;;  %2808 = vmatmul.msk.f32.gmra.mxu3 %vm418_vm0, %v2800_v13  ;;  %v2815_v13 = vld [vmem:[%s4618_s1 + $0xd8] sm:$0xff] }
  0xfb   : > { %v1052_v16 = vpop.permute.xlu1 %1051  ;;  %v1062_v17 = vpop.permute.xlu0 %1061 }
  0xfc   : > { %v1069_v20 = vsel %vm1067_vm6, %v1054_v49, %v1062_v17  ;;  %v1073_v21 = vsel %vm1067_vm6, %v1062_v17, %v1054_v49  ;;  %v1068_v22 = vsel %vm1067_vm6, %v1052_v16, %v1060_v10  ;;  %v1072_v23 = vsel %vm1067_vm6, %v1060_v10, %v1052_v16  ;;  %1426 = vperm.xlu1 %2980, %v1420_v58  }
  0xfd   : > { %v1085_v2 = vmul.f32 %v3535_v43, %v1069_v20  ;;  %v1086_v24 = vmul.f32 %v3537_v48, %v1073_v21  ;;  %v1083_v25 = vmul.f32 %v3535_v43, %v1068_v22  ;;  %v1084_v4 = vmul.f32 %v3537_v48, %v1072_v23 }
  0xfe   : > { %v1304_v57 = vpop.permute.xlu2 %1303  ;;  %v3663_v16 = vperm.slane %v2837_v12, 0  ;;  %v3665_v17 = vperm.slane %v2837_v12, 1 }
  0xff   : > { %1122 = vmatpush.msrb.mxu0 %v1085_v2  ;;  %1151 = vmatpush.msrb.mxu1 %v1086_v24 }
 0x100   : > { %4678 = vst [vmem:[#allocation17_spill] sm:$0xff] %v3663_v16 }
 0x101   : > { %2805 = vmatmul.msk.f32.gmra.mxu2 %vm418_vm0, %v2801_v28  ;;  %2809 = vmatmul.msk.f32.gmra.mxu3 %vm418_vm0, %v2801_v28  ;;  %4679 = vst [vmem:[#allocation18_spill] sm:$0xff] %v3665_v17 }
 0x102   : > { %1123 = vmatpush.msrb.mxu0 %v1083_v25  ;;  %1152 = vmatpush.msrb.mxu1 %v1084_v4 }
 0x103   : > { %2816 = vmatmul.msk.f32.vlgmr.msrb.gmra.mxu0 %vm418_vm0, %v2812_v30  ;;  %2820 = vmatmul.msk.f32.vlgmr.msrb.gmra.mxu1 %vm418_vm0, %v2812_v30  ;;  %v2826_v30 = vld [vmem:[%s4618_s1 + $0xe8] sm:$0xff] }
 0x104   : > { %v1189_v5 = vpop.permute.xlu1 %1188  ;;  %v1181_v3 = vpop.permute.xlu0 %1180 }
 0x105   : > { %v1194_v33 = vsel %vm1190_vm7, %v1181_v3, %v1189_v5  ;;  %v1198_v7 = vsel %vm1190_vm7, %v1189_v5, %v1181_v3 }
 0x106   : > { %v1212_v34 = vmul.f32 %v3596_v31, %v1194_v33  ;;  %v1213_v35 = vmul.f32 %v3598_v32, %v1198_v7  ;;  %v1310_v20 = vpop.permute.xlu2 %1309  ;;  %v1421_v33 = vld [vmem:[%s4619_s2 + $0x8] sm:$0xff] }
 0x107   : > { %1431 = vperm.xlu0 %2982, %v1421_v33  }
 0x108   : > { %1243 = vmatpush.msrb.mxu2 %v1212_v34  ;;  %1272 = vmatpush.msrb.mxu3 %v1213_v35 }
 0x109   : > { %2806 = vmatmul.msk.f32.gmra.mxu2 %vm418_vm0, %v2802_v36  ;;  %2810 = vmatmul.msk.f32.gmra.mxu3 %vm418_vm0, %v2802_v36 }
 0x10b   : > { %2817 = vmatmul.msk.f32.gmra.mxu0 %vm418_vm0, %v2813_v38  ;;  %2821 = vmatmul.msk.f32.gmra.mxu1 %vm418_vm0, %v2813_v38 }
 0x10c   : > { %v1177_v6 = vpop.permute.xlu1 %1176  ;;  %v1187_v39 = vpop.permute.xlu0 %1186 }
 0x10d   : > { %v1193_v40 = vsel %vm1190_vm7, %v1179_v1, %v1187_v39  ;;  %v1197_v41 = vsel %vm1190_vm7, %v1187_v39, %v1179_v1  ;;  %v1192_v42 = vsel %vm1190_vm7, %v1177_v6, %v1185_v37  ;;  %v1196_v49 = vsel %vm1190_vm7, %v1185_v37, %v1177_v6  ;;  %v2827_v6 = vld [vmem:[%s4618_s1 + $0xf0] sm:$0xff] }
 0x10e   : > { %v1210_v52 = vmul.f32 %v3596_v31, %v1193_v40  ;;  %v1211_v53 = vmul.f32 %v3598_v32, %v1197_v41  ;;  %v1208_v54 = vmul.f32 %v3596_v31, %v1192_v42  ;;  %v1209_v55 = vmul.f32 %v3598_v32, %v1196_v49  ;;  %v1298_v41 = vpop.permute.xlu2 %1297 }
 0x110   : > { %1244 = vmatpush.msrb.mxu2 %v1210_v52  ;;  %1273 = vmatpush.msrb.mxu3 %v1211_v53  ;;  %v2828_v53 = vld [vmem:[%s4618_s1 + $0xf8] sm:$0xff] }
 0x112   : > { %1245 = vmatpush.msrb.mxu2 %v1208_v54  ;;  %1274 = vmatpush.msrb.mxu3 %v1209_v55  ;;  %v2838_v54 = vld [vmem:[%s4618_s1 + $0x100] sm:$0xff]  ;;  %v3720_v55 = vpop.f32.mrf.mxu2 }
 0x113   : > { %2818 = vmatmul.msk.f32.gmra.mxu0 %vm418_vm0, %v2814_v56  ;;  %2822 = vmatmul.msk.f32.gmra.mxu1 %vm418_vm0, %v2814_v56  ;;  %v3722_v56 = vpop.f32.mrf.mxu3 }
 0x114   : > { %v1183_v59 = vpop.permute.xlu1 %1182  ;;  %v1175_v60 = vpop.permute.xlu0 %1174 }
 0x115   : > { %v1191_v61 = vsel %vm1190_vm7, %v1175_v60, %v1183_v59  ;;  %v1195_v62 = vsel %vm1190_vm7, %v1183_v59, %v1175_v60  ;;  %v3645_v63 = vpop.f32.mrf.mxu0  ;;  %v3647_v8 = vpop.f32.mrf.mxu1  ;;  %v2839_v59 = vld [vmem:[%s4618_s1 + $0x108] sm:$0xff] }
 0x116   : > { %v1206_v9 = vmul.f32 %v3596_v31, %v1191_v61  ;;  %v1207_v10 = vmul.f32 %v3598_v32, %v1195_v62  ;;  %v519_v43 = vadd.f32 %v3720_v55, %v3645_v63  ;;  %v548_v0 = vadd.f32 %v3722_v56, %v3647_v8 }
 0x118   : > { %1246 = vmatpush.msrb.mxu2 %v1206_v9  ;;  %1275 = vmatpush.msrb.mxu3 %v1207_v10  ;;  %v2840_v10 = vld [vmem:[%s4618_s1 + $0x110] sm:$0xff] }
 0x119   : > { %2829 = vmatmul.msk.f32.vlgmr.msrb.gmra.mxu2 %vm418_vm0, %v2825_v11  ;;  %2833 = vmatmul.msk.f32.vlgmr.msrb.gmra.mxu3 %vm418_vm0, %v2825_v11  ;;  %v1422_v11 = vld [vmem:[%s4619_s2 + $0x10] sm:$0xff] }
 0x11a   : > { %v3737_v61 = vpop.f32.mrf.mxu2  ;;  %1436 = vperm.xlu2 %2981, %v1422_v11  }
 0x11b   : > { %2819 = vmatmul.msk.f32.gmra.mxu0 %vm418_vm0, %v2815_v13  ;;  %2823 = vmatmul.msk.f32.gmra.mxu1 %vm418_vm0, %v2815_v13  ;;  %v3735_v60 = vpop.f32.mrf.mxu3 }
 0x11c   : > { %v1302_v21 = vpop.permute.xlu1 %1301  ;;  %v1312_v22 = vpop.permute.xlu0 %1311 }
 0x11d   : > { %v1317_v23 = vsel %vm1313_vm8, %v1304_v57, %v1312_v22  ;;  %v1321_v1 = vsel %vm1313_vm8, %v1312_v22, %v1304_v57  ;;  %v3673_v2 = vpop.f32.mrf.mxu0  ;;  %v3675_v24 = vpop.f32.mrf.mxu1  ;;  %v1316_v25 = vsel %vm1313_vm8, %v1302_v21, %v1310_v20  ;;  %v1320_v4 = vsel %vm1313_vm8, %v1310_v20, %v1302_v21  ;;  %v2841_v22 = vld [vmem:[%s4618_s1 + $0x118] sm:$0xff] }
 0x11e   : > { %v1335_v28 = vmul.f32 %v3663_v16, %v1317_v23  ;;  %v1336_v29 = vmul.f32 %v3665_v17, %v1321_v1  ;;  %v1333_v5 = vmul.f32 %v3663_v16, %v1316_v25  ;;  %v1334_v3 = vmul.f32 %v3665_v17, %v1320_v4 }
 0x11f   : > { %v551_v63 = vadd.f32 %v3735_v60, %v3675_v24  ;;  %v522_v8 = vadd.f32 %v3737_v61, %v3673_v2 }
 0x120   : > { %1366 = vmatpush.msra.mxu0 %v1335_v28  ;;  %1395 = vmatpush.msra.mxu1 %v1336_v29 }
 0x121   : > { %2830 = vmatmul.msk.f32.gmra.mxu2 %vm418_vm0, %v2826_v30  ;;  %2834 = vmatmul.msk.f32.gmra.mxu3 %vm418_vm0, %v2826_v30 }
 0x122   : > { %1367 = vmatpush.msra.mxu0 %v1333_v5  ;;  %1396 = vmatpush.msra.mxu1 %v1334_v3  ;;  %v3751_v13 = vpop.f32.mrf.mxu2 }
 0x123   : > { %v3749_v12 = vpop.f32.mrf.mxu3 }
 0x124   : > { %v1308_v7 = vpop.permute.xlu1 %1307  ;;  %v1300_v34 = vpop.permute.xlu0 %1299 }
 0x125   : > { %v1315_v35 = vsel %vm1313_vm8, %v1300_v34, %v1308_v7  ;;  %v1319_v36 = vsel %vm1313_vm8, %v1308_v7, %v1300_v34  ;;  %v3702_v39 = vpop.f32.mrf.mxu0  ;;  %v3704_v40 = vpop.f32.mrf.mxu1 }
 0x126   : > { %v1331_v37 = vmul.f32 %v3663_v16, %v1315_v35  ;;  %v1332_v38 = vmul.f32 %v3665_v17, %v1319_v36  ;;  %v525_v2 = vadd.f32 %v3751_v13, %v3702_v39 }
 0x128   : > { %1368 = vmatpush.msra.mxu0 %v1331_v37  ;;  %1397 = vmatpush.msra.mxu1 %v1332_v38 }
 0x129   : > { %2831 = vmatmul.msk.f32.gmra.mxu2 %vm418_vm0, %v2827_v6  ;;  %2835 = vmatmul.msk.f32.gmra.mxu3 %vm418_vm0, %v2827_v6 }
 0x12a   : > { %v3758_v23 = vpop.f32.mrf.mxu2 }
 0x12b   : > { %v3760_v1 = vpop.f32.mrf.mxu3 }
 0x12c   : > { %v1306_v42 = vpop.permute.xlu0 %1305 }
 0x12d   : > { %v1314_v49 = vsel %vm1313_vm8, %v1298_v41, %v1306_v42  ;;  %v1318_v50 = vsel %vm1313_vm8, %v1306_v42, %v1298_v41  ;;  %v3724_v57 = vpop.f32.mrf.mxu0  ;;  %v3726_v58 = vpop.f32.mrf.mxu1 }
 0x12e   : > { %v1329_v51 = vmul.f32 %v3663_v16, %v1314_v49  ;;  %v1330_v52 = vmul.f32 %v3665_v17, %v1318_v50 }
 0x130   : > { %1369 = vmatpush.msra.mxu0 %v1329_v51  ;;  %1398 = vmatpush.msra.mxu1 %v1330_v52 }
 0x131   : > { %2832 = vmatmul.msk.f32.gmra.mxu2 %vm418_vm0, %v2828_v53  ;;  %2836 = vmatmul.msk.f32.gmra.mxu3 %vm418_vm0, %v2828_v53 }
 0x132   : > { %2842 = vmatmul.msk.f32.vlgmr.msra.gmra.mxu0 %vm418_vm0, %v2838_v54  ;;  %2846 = vmatmul.msk.f32.vlgmr.msra.gmra.mxu1 %vm418_vm0, %v2838_v54 }
 0x135   : > { %v633_v62 = vpop.f32.mrf.mxu0  ;;  %v662_v9 = vpop.f32.mrf.mxu1 }
 0x136   : > { %v674_v14 = vadd.f32 %v633_v62, %v519_v43  ;;  %v675_v45 = vadd.f32 %v662_v9, %v548_v0 }
 0x13a   : > { %2843 = vmatmul.msk.f32.gmra.mxu0 %vm418_vm0, %v2839_v59  ;;  %2847 = vmatmul.msk.f32.gmra.mxu1 %vm418_vm0, %v2839_v59 }
 0x13d   : > { %v636_v20 = vpop.f32.mrf.mxu0  ;;  %v665_v21 = vpop.f32.mrf.mxu1 }
 0x13e   : > { %v676_v55 = vadd.f32 %v636_v20, %v522_v8  ;;  %v677_v56 = vadd.f32 %v665_v21, %v551_v63 }
 0x142   : > { %2844 = vmatmul.msk.f32.gmra.mxu0 %vm418_vm0, %v2840_v10  ;;  %2848 = vmatmul.msk.f32.gmra.mxu1 %vm418_vm0, %v2840_v10 }
 0x145   : > { %v3762_v25 = vpop.f32.mrf.mxu0  ;;  %v3764_v4 = vpop.f32.mrf.mxu1 }
 0x146   : > { %v756_v28 = vpop.f32.mrf.mxu2  ;;  %v785_v29 = vpop.f32.mrf.mxu3 }
 0x147   : > { %v797_v46 = vadd.f32 %v756_v28, %v674_v14  ;;  %v798_v19 = vadd.f32 %v785_v29, %v675_v45 }
 0x14a   : > { %2845 = vmatmul.msk.f32.gmra.mxu0 %vm418_vm0, %v2841_v22  ;;  %2849 = vmatmul.msk.f32.gmra.mxu1 %vm418_vm0, %v2841_v22 }
 0x14d   : > { %v3766_v30 = vpop.f32.mrf.mxu0  ;;  %v3768_v5 = vpop.f32.mrf.mxu1 }
 0x14e   : > { %v759_v3 = vpop.f32.mrf.mxu2  ;;  %v788_v33 = vpop.f32.mrf.mxu3 }
 0x14f   : > { %v799_v62 = vadd.f32 %v759_v3, %v676_v55  ;;  %v800_v9 = vadd.f32 %v788_v33, %v677_v56 }
 0x155   : > { %v879_v7 = vpop.f32.mrf.mxu0  ;;  %v908_v34 = vpop.f32.mrf.mxu1 }
 0x156   : > { %v3770_v35 = vpop.f32.mrf.mxu2  ;;  %v3772_v36 = vpop.f32.mrf.mxu3 }
 0x15d   : > { %v882_v37 = vpop.f32.mrf.mxu0  ;;  %v911_v38 = vpop.f32.mrf.mxu1 }
 0x15e   : > { %v3774_v6 = vpop.f32.mrf.mxu2  ;;  %v3776_v41 = vpop.f32.mrf.mxu3 }
 0x165   : > { %v3778_v42 = vpop.f32.mrf.mxu0  ;;  %v3780_v49 = vpop.f32.mrf.mxu1 }
 0x166   : > { %v3802_v18 = vpop.permute.xlu1 %1441 }
 0x167   : > { %4683 = vst [vmem:[#allocation22_spill] sm:$0xff] %v3802_v18 }
 0x16d   : > { %v3782_v52 = vpop.f32.mrf.mxu0  ;;  %v3784_v53 = vpop.f32.mrf.mxu1 }
 0x16e   : > { %4680 = vst [vmem:[#allocation19_spill] sm:$0xff] %v3784_v53  ;;  %v921_v53 = vadd.f32 %v908_v34, %v798_v19  ;;  %v923_v34 = vadd.f32 %v911_v38, %v800_v9  ;;  %v1427_v61 = vpop.permute.xlu1 %1426 }
 0x174   : > { %v1002_v50 = vpop.f32.mrf.mxu2  ;;  %v1031_v51 = vpop.f32.mrf.mxu3 }
 0x175   : > { %v1044_v0 = vadd.f32 %v1031_v51, %v921_v53  ;;  %v4685_v55 = vld [vmem:[#allocation19_spill] sm:$0xff] }
 0x17c   : > { %v1005_v54 = vpop.f32.mrf.mxu2  ;;  %v1034_v59 = vpop.f32.mrf.mxu3 }
 0x17d   : > { %v1046_v21 = vadd.f32 %v1034_v59, %v923_v34 }
 0x180   : > { %v1125_v10 = vpop.f32.mrf.mxu0  ;;  %v1154_v11 = vpop.f32.mrf.mxu1 }
 0x181   : > { %v1167_v45 = vadd.f32 %v1154_v11, %v1044_v0 }
 0x184   : > { %v3786_v22 = vpop.f32.mrf.mxu2  ;;  %v3788_v32 = vpop.f32.mrf.mxu3 }
 0x188   : > { %v1128_v31 = vpop.f32.mrf.mxu0  ;;  %v1157_v17 = vpop.f32.mrf.mxu1 }
 0x18c   : > { %v3790_v16 = vpop.f32.mrf.mxu2  ;;  %v3792_v27 = vpop.f32.mrf.mxu3 }
 0x18d   : > { %4681 = vst [vmem:[#allocation20_spill] sm:$0xff] %v3790_v16  ;;  %v920_v16 = vadd.f32 %v879_v7, %v797_v46  ;;  %v922_v7 = vadd.f32 %v882_v37, %v799_v62  ;;  %v1169_v37 = vadd.f32 %v1157_v17, %v1046_v21 }
 0x18e   : > { %4682 = vst [vmem:[#allocation21_spill] sm:$0xff] %v3792_v27 }
 0x18f   : > { %v1043_v43 = vadd.f32 %v1002_v50, %v920_v16  ;;  %v554_v16 = vadd.f32 %v3749_v12, %v3704_v40  ;;  %v1045_v20 = vadd.f32 %v1005_v54, %v922_v7 }
 0x190   : > { %v3794_v26 = vpop.f32.mrf.mxu0  ;;  %v3796_v48 = vpop.f32.mrf.mxu1 }
 0x191   : > { %v1166_v14 = vadd.f32 %v1125_v10, %v1043_v43  ;;  %v679_v33 = vadd.f32 %v3764_v4, %v554_v16  ;;  %v1168_v50 = vadd.f32 %v1128_v31, %v1045_v20 }
 0x193   : > { %v802_v12 = vadd.f32 %v3772_v36, %v679_v33 }
 0x195   : > { %v925_v53 = vadd.f32 %v3780_v49, %v802_v12  ;;  %v4687_v62 = vld [vmem:[#allocation21_spill] sm:$0xff] }
 0x197   : > { %v1048_v11 = vadd.f32 %v3788_v32, %v925_v53 }
 0x198   : > { %v3804_v15 = vpop.f32.mrf.mxu0  ;;  %v3806_v27 = vpop.f32.mrf.mxu1 }
 0x199   : > { %4684 = vst [vmem:[#allocation23_spill] sm:$0xff] %v3806_v27  ;;  %v1171_v0 = vadd.f32 %v3796_v48, %v1048_v11 }
 0x19c   : > { %v1248_v44 = vpop.f32.mrf.mxu2  ;;  %v1277_v47 = vpop.f32.mrf.mxu3 }
 0x19d   : > { %v1289_v28 = vadd.f32 %v1248_v44, %v1166_v14  ;;  %v1290_v29 = vadd.f32 %v1277_v47, %v1167_v45  ;;  %v678_v47 = vadd.f32 %v3762_v25, %v525_v2  ;;  %v1432_v25 = vpop.permute.xlu0 %1431  ;;  %v4686_v14 = vld [vmem:[#allocation20_spill] sm:$0xff] }
 0x19f   : > { %v801_v40 = vadd.f32 %v3770_v35, %v678_v47  ;;  %v528_v35 = vadd.f32 %v3758_v23, %v3724_v57 }
 0x1a0   : > { %v4688_v34 = vld [vmem:[#allocation23_spill] sm:$0xff] }
 0x1a1   : > { %v924_v17 = vadd.f32 %v3778_v42, %v801_v40  ;;  %v680_v42 = vadd.f32 %v3766_v30, %v528_v35  ;;  %v1437_v30 = vpop.permute.xlu2 %1436  ;;  %v2851_v35 = vld [vmem:[%s4620_s3 + $0x88] sm:$0xff] }
 0x1a3   : > { %v1047_v10 = vadd.f32 %v3786_v22, %v924_v17  ;;  %v2850_v17 = vld [vmem:[%s4620_s3 + $0x80] sm:$0xff] }
 0x1a4   : > { %v1251_v18 = vpop.f32.mrf.mxu2  ;;  %v1280_v27 = vpop.f32.mrf.mxu3 }
 0x1a5   : > { %v1291_v39 = vadd.f32 %v1251_v18, %v1168_v50  ;;  %v1292_v13 = vadd.f32 %v1280_v27, %v1169_v37  ;;  %v557_v18 = vadd.f32 %v3760_v1, %v3726_v58  ;;  %v1170_v43 = vadd.f32 %v3794_v26, %v1047_v10 }
 0x1a6   : > { %v803_v58 = vadd.f32 %v3774_v6, %v680_v42  ;;  %v4691_v42 = vld [vmem:[#allocation3_spill] sm:$0xff] }
 0x1a7   : > { %v681_v49 = vadd.f32 %v3768_v5, %v557_v18 }
 0x1a8   : > { %v926_v5 = vadd.f32 %v3782_v52, %v803_v58  ;;  %v2852_v58 = vld [vmem:[%s4620_s3 + $0x90] sm:$0xff] }
 0x1a9   : > { %v804_v1 = vadd.f32 %v3776_v41, %v681_v49 }
 0x1aa   : > { %v1049_v45 = vadd.f32 %v4686_v14, %v926_v5 }
 0x1ab   : > { %v927_v6 = vadd.f32 %v4685_v55, %v804_v1 }
 0x1ac   : > { %v1254_v27 = vpop.f32.mrf.mxu2  ;;  %v1283_v36 = vpop.f32.mrf.mxu3  ;;  %v1172_v7 = vadd.f32 %v3804_v15, %v1049_v45 }
 0x1ad   : > { %v1293_v22 = vadd.f32 %v1254_v27, %v1170_v43  ;;  %v1294_v32 = vadd.f32 %v1283_v36, %v1171_v0  ;;  %v1050_v9 = vadd.f32 %v4687_v62, %v927_v6  ;;  %v4692_v43 = vld [vmem:[#allocation4_spill] sm:$0xff]  ;;  %v1497_v62 = vld [vmem:[%s4620_s3] sm:$0xff] }
 0x1af   : > { %v1371_v46 = vpop.f32.mrf.mxu0  ;;  %v1400_v19 = vpop.f32.mrf.mxu1 }
 0x1b0   : > { %v1412_v24 = vadd.f32 %v1371_v46, %v1289_v28  ;;  %v1413_v60 = vadd.f32 %v1400_v19, %v1290_v29 }
 0x1b2   : > { %v1444_v3 = vadd.f32 %v1427_v61, %v1412_v24  ;;  %v1445_v44 = vadd.f32 %v1427_v61, %v1413_v60  ;;  %v1173_v24 = vadd.f32 %v4688_v34, %v1050_v9 }
 0x1b4   : > { %v3818_v38 = vmax.f32 %v1444_v3, 0.0  ;;  %v3820_v51 = vmax.f32 %v1445_v44, 0.0  ;;  %v1257_v46 = vpop.f32.mrf.mxu2  ;;  %v1286_v19 = vpop.f32.mrf.mxu3  ;;  %v4689_v3 = vld [vmem:[#allocation22_spill] sm:$0xff] }
 0x1b5   : > { %v1295_v52 = vadd.f32 %v1257_v46, %v1172_v7  ;;  %v1296_v2 = vadd.f32 %v1286_v19, %v1173_v24  ;;  %v1498_v7 = vld [vmem:[%s4620_s3 + $0x8] sm:$0xff] }
 0x1b6   : > { %1473 = vrot.lane.b32.xlu1 %v3820_v51, %s3017_s19  ;;  %1465 = vrot.lane.b32.xlu0 %v3818_v38, %s3017_s19 }
 0x1b7   : > { %v1374_v4 = vpop.f32.mrf.mxu0  ;;  %v1403_v31 = vpop.f32.mrf.mxu1 }
 0x1b8   : > { %v1414_v54 = vadd.f32 %v1374_v4, %v1291_v39  ;;  %v1415_v59 = vadd.f32 %v1403_v31, %v1292_v13 }
 0x1ba   : > { %v1446_v63 = vadd.f32 %v1432_v25, %v1414_v54  ;;  %v1447_v8 = vadd.f32 %v1432_v25, %v1415_v59 }
 0x1bc   : > { %v3840_v57 = vmax.f32 %v1446_v63, 0.0  ;;  %v3842_v23 = vmax.f32 %v1447_v8, 0.0 }
 0x1be   : > { %1475 = vrot.lane.b32.xlu2 %v3842_v23, %s3017_s19  ;;  %1467 = vrot.lane.b32.xlu1 %v3840_v57, %s3017_s19 }
 0x1bf   : > { %1643 = vrot.lane.b32.xlu0 %v3840_v57, %s3018_s20  ;;  %v1377_v26 = vpop.f32.mrf.mxu0  ;;  %v1406_v48 = vpop.f32.mrf.mxu1 }
 0x1c0   : > { %v1416_v56 = vadd.f32 %v1377_v26, %v1293_v22  ;;  %v1417_v41 = vadd.f32 %v1406_v48, %v1294_v32 }
 0x1c2   : > { %v1448_v28 = vadd.f32 %v1437_v30, %v1416_v56  ;;  %v1449_v29 = vadd.f32 %v1437_v30, %v1417_v41 }
 0x1c4   : > { %v3858_v60 = vmax.f32 %v1448_v28, 0.0  ;;  %v3860_v16 = vmax.f32 %v1449_v29, 0.0  ;;  %v2853_v28 = vld [vmem:[%s4620_s3 + $0x98] sm:$0xff] }
 0x1c6   : > { %1469 = vrot.lane.b32.xlu2 %v3858_v60, %s3017_s19  ;;  %1645 = vrot.lane.b32.xlu1 %v3858_v60, %s3018_s20 }
 0x1c7   : > { %1477 = vrot.lane.b32.xlu0 %v3860_v16, %s3017_s19  ;;  %v1380_v61 = vpop.f32.mrf.mxu0  ;;  %v1409_v20 = vpop.f32.mrf.mxu1 }
 0x1c8   : > { %v1418_v15 = vadd.f32 %v1380_v61, %v1295_v52  ;;  %v1419_v21 = vadd.f32 %v1409_v20, %v1296_v2  ;;  %v4693_v2 = vld [vmem:[#allocation5_spill] sm:$0xff]  ;;  %v4694_v20 = vld [vmem:[#allocation6_spill] sm:$0xff] }
 0x1ca   : > { %v1450_v44 = vadd.f32 %v4689_v3, %v1418_v15  ;;  %v1451_v47 = vadd.f32 %v4689_v3, %v1419_v21  ;;  %v2446_v21 = vld [vmem:[%s4621_s4] sm:$0xff]  ;;  %v2448_v3 = vld [vmem:[%s4621_s4 + $0x10] sm:$0xff] }
 0x1cc   : > { %v3870_v33 = vmax.f32 %v1450_v44, 0.0  ;;  %v3872_v50 = vmax.f32 %v1451_v47, 0.0 }
 0x1ce   : > { %1595 = vmatpush.msrb.mxu0 %v3870_v33  ;;  %1624 = vmatpush.msrb.mxu1 %v3872_v50 }
 0x1cf   : > { %1653 = vrot.lane.b32.xlu2 %v3860_v16, %s3018_s20  ;;  %1479 = vrot.lane.b32.xlu1 %v3872_v50, %s3017_s19 }
 0x1d0   : > { %1649 = vrot.lane.b32.xlu0 %v3820_v51, %s3018_s20  ;;  %1596 = vmatpush.msrb.mxu0 %v3858_v60 }
 0x1d1   : > { %1625 = vmatpush.msrb.mxu1 %v3860_v16 }
 0x1d2   : > { %1597 = vmatpush.msrb.mxu0 %v3840_v57 }
 0x1d3   : > { %1626 = vmatpush.msrb.mxu1 %v3842_v23 }
 0x1d4   : > { %1598 = vmatpush.msrb.mxu0 %v3818_v38 }
 0x1d5   : > { %1627 = vmatpush.msrb.mxu1 %v3820_v51  ;;  %2862 = vmatmul.msk.f32.vlgmr.msrb.gmra.mxu0 %vm418_vm0, %v2850_v17 }
 0x1d6   : > { %2866 = vmatmul.msk.f32.vlgmr.msrb.gmra.mxu1 %vm418_vm0, %v2850_v17 }
 0x1d7   : > { %1471 = vrot.lane.b32.xlu2 %v3870_v33, %s3017_s19  ;;  %1651 = vrot.lane.b32.xlu1 %v3842_v23, %s3018_s20 }
 0x1d8   : > { %1875 = vrot.lane.b32.xlu0 %v3858_v60, %s3020_s22 }
 0x1dd   : > { %2863 = vmatmul.msk.f32.gmra.mxu0 %vm418_vm0, %v2851_v35 }
 0x1de   : > { %2867 = vmatmul.msk.f32.gmra.mxu1 %vm418_vm0, %v2851_v35 }
 0x1df   : > { %1883 = vrot.lane.b32.xlu1 %v3860_v16, %s3020_s22  ;;  %1641 = vrot.lane.b32.xlu2 %v3818_v38, %s3018_s20 }
 0x1e0   : > { %1760 = vrot.lane.b32.xlu0 %v3858_v60, %s3019_s21 }
 0x1e5   : > { %2864 = vmatmul.msk.f32.gmra.mxu0 %vm418_vm0, %v2852_v58 }
 0x1e6   : > { %2868 = vmatmul.msk.f32.gmra.mxu1 %vm418_vm0, %v2852_v58  ;;  %v2872_v58 = vld [vmem:[%s4620_s3 + $0x30] sm:$0xff] }
 0x1e7   : > { %1873 = vrot.lane.b32.xlu1 %v3840_v57, %s3020_s22  ;;  %1881 = vrot.lane.b32.xlu2 %v3842_v23, %s3020_s22 }
 0x1e8   : > { %1655 = vrot.lane.b32.xlu0 %v3872_v50, %s3018_s20 }
 0x1ed   : > { %2865 = vmatmul.msk.f32.gmra.mxu0 %vm418_vm0, %v2853_v28 }
 0x1ee   : > { %2869 = vmatmul.msk.f32.gmra.mxu1 %vm418_vm0, %v2853_v28 }
 0x1ef   : > { %1768 = vrot.lane.b32.xlu1 %v3860_v16, %s3019_s21  ;;  %1871 = vrot.lane.b32.xlu2 %v3818_v38, %s3020_s22 }
 0x1f0   : > { %1879 = vrot.lane.b32.xlu0 %v3820_v51, %s3020_s22 }
 0x1f7   : > { %1758 = vrot.lane.b32.xlu1 %v3840_v57, %s3019_s21  ;;  %1647 = vrot.lane.b32.xlu2 %v3870_v33, %s3018_s20 }
 0x1f8   : > { %1756 = vrot.lane.b32.xlu0 %v3818_v38, %s3019_s21 }
 0x1ff   : > { %1764 = vrot.lane.b32.xlu1 %v3820_v51, %s3019_s21  ;;  %1766 = vrot.lane.b32.xlu2 %v3842_v23, %s3019_s21 }
 0x200   : > { %2111 = vrot.lane.b32.xlu0 %v3842_v23, %s3022_s24 }
 0x207   : > { %2105 = vrot.lane.b32.xlu1 %v3858_v60, %s3022_s24  ;;  %2113 = vrot.lane.b32.xlu2 %v3860_v16, %s3022_s24 }
 0x208   : > { %2101 = vrot.lane.b32.xlu0 %v3818_v38, %s3022_s24 }
 0x20f   : > { %1877 = vrot.lane.b32.xlu1 %v3870_v33, %s3020_s22  ;;  %2103 = vrot.lane.b32.xlu2 %v3840_v57, %s3022_s24 }
 0x210   : > { %1770 = vrot.lane.b32.xlu0 %v3872_v50, %s3019_s21 }
 0x217   : > { %1990 = vrot.lane.b32.xlu1 %v3858_v60, %s3021_s23  ;;  %1885 = vrot.lane.b32.xlu2 %v3872_v50, %s3020_s22 }
 0x218   : > { %1996 = vrot.lane.b32.xlu0 %v3842_v23, %s3021_s23  ;;  %v1476_v37 = vpop.permute.xlu2 %1475 }
 0x21f   : > { %2109 = vrot.lane.b32.xlu1 %v3820_v51, %s3022_s24  ;;  %1762 = vrot.lane.b32.xlu2 %v3870_v33, %s3019_s21 }
 0x220   : > { %2343 = vrot.lane.b32.xlu0 %v3860_v16, %s3024_s16  ;;  %v1470_v40 = vpop.permute.xlu2 %1469 }
 0x227   : > { %1986 = vrot.lane.b32.xlu1 %v3818_v38, %s3021_s23  ;;  %1998 = vrot.lane.b32.xlu2 %v3860_v16, %s3021_s23 }
 0x228   : > { %2115 = vrot.lane.b32.xlu0 %v3872_v50, %s3022_s24  ;;  %v1474_v12 = vpop.permute.xlu1 %1473  ;;  %v1466_v39 = vpop.permute.xlu0 %1465 }
 0x229   : > { %v3954_v13 = vpop.permute.xlu2 %1653  ;;  %v1485_v26 = vsel %vm391_vm1, %v1474_v12, %v1466_v39  ;;  %v1481_v5 = vsel %vm391_vm1, %v1466_v39, %v1474_v12 }
 0x22a   : > { %v1489_v14 = vmul.f32 %v1485_v26, %v4691_v42  ;;  %v1490_v9 = vmul.f32 %v1481_v5, %v4692_v43 }
 0x22f   : > { %2000 = vrot.lane.b32.xlu1 %v3872_v50, %s3021_s23  ;;  %1988 = vrot.lane.b32.xlu2 %v3840_v57, %s3021_s23 }
 0x230   : > { %1992 = vrot.lane.b32.xlu0 %v3870_v33, %s3021_s23  ;;  %v1468_v25 = vpop.permute.xlu1 %1467 }
 0x231   : > { %v1472_v4 = vpop.permute.xlu2 %1471  ;;  %v3962_v31 = vpop.permute.xlu0 %1643  ;;  %v1486_v22 = vsel %vm391_vm1, %v1476_v37, %v1468_v25  ;;  %v1482_v32 = vsel %vm391_vm1, %v1468_v25, %v1476_v37 }
 0x232   : > { %v1491_v55 = vmul.f32 %v1486_v22, %v4691_v42  ;;  %v1492_v6 = vmul.f32 %v1482_v32, %v4692_v43 }
 0x237   : > { %2341 = vrot.lane.b32.xlu1 %v3842_v23, %s3024_s16  ;;  %2107 = vrot.lane.b32.xlu2 %v3870_v33, %s3022_s24 }
 0x238   : > { %2333 = vrot.lane.b32.xlu0 %v3840_v57, %s3024_s16  ;;  %v3975_v53 = vpop.permute.xlu1 %1645 }
 0x239   : > { %v3977_v54 = vpop.permute.xlu2 %1641  ;;  %v1478_v59 = vpop.permute.xlu0 %1477  ;;  %v1663_v52 = vsel %vm575_vm2, %v3954_v13, %v3975_v53 }
 0x23a   : > { %v1487_v8 = vsel %vm391_vm1, %v1478_v59, %v1470_v40  ;;  %v1483_v1 = vsel %vm391_vm1, %v1470_v40, %v1478_v59 }
 0x23b   : > { %v1493_v30 = vmul.f32 %v1487_v8, %v4691_v42  ;;  %v1494_v48 = vmul.f32 %v1483_v1, %v4692_v43 }
 0x23f   : > { %2331 = vrot.lane.b32.xlu1 %v3818_v38, %s3024_s16  ;;  %1994 = vrot.lane.b32.xlu2 %v3820_v51, %s3021_s23 }
 0x240   : > { %2228 = vrot.lane.b32.xlu0 %v3860_v16, %s3023_s11 }
 0x241   : > { %v1480_v18 = vpop.permute.xlu1 %1479  ;;  %v3990_v27 = vpop.permute.xlu2 %1881 }
 0x242   : > { %v1484_v10 = vsel %vm391_vm1, %v1472_v4, %v1480_v18  ;;  %v1488_v11 = vsel %vm391_vm1, %v1480_v18, %v1472_v4  ;;  %v3996_v63 = vpop.permute.xlu0 %1649 }
 0x243   : > { %v1495_v49 = vmul.f32 %v1488_v11, %v4691_v42  ;;  %v1496_v0 = vmul.f32 %v1484_v10, %v4692_v43  ;;  %v1657_v40 = vsel %vm575_vm2, %v3977_v54, %v3996_v63  ;;  %v1661_v12 = vsel %vm575_vm2, %v3996_v63, %v3977_v54  ;;  %v2449_v54 = vld [vmem:[%s4621_s4 + $0x18] sm:$0xff]  ;;  %v2870_v10 = vld [vmem:[%s4620_s3 + $0x20] sm:$0xff]  ;;  %v2447_v11 = vld [vmem:[%s4621_s4 + $0x8] sm:$0xff] }
 0x244   : > { %v1665_v17 = vmul.f32 %v1661_v12, %v4693_v2  ;;  %v2871_v42 = vld [vmem:[%s4620_s3 + $0x28] sm:$0xff] }
 0x245   : > { %1525 = vmatpush.msra.mxu2 %v1495_v49  ;;  %1554 = vmatpush.msra.mxu3 %v1496_v0 }
 0x247   : > { %2345 = vrot.lane.b32.xlu1 %v3872_v50, %s3024_s16  ;;  %2335 = vrot.lane.b32.xlu2 %v3858_v60, %s3024_s16 }
 0x248   : > { %2337 = vrot.lane.b32.xlu0 %v3870_v33, %s3024_s16  ;;  %1526 = vmatpush.msra.mxu2 %v1493_v30 }
 0x249   : > { %1555 = vmatpush.msra.mxu3 %v1494_v48  ;;  %v1652_v56 = vpop.permute.xlu1 %1651  ;;  %v4027_v41 = vpop.permute.xlu2 %1871 }
 0x24a   : > { %1527 = vmatpush.msra.mxu2 %v1491_v55  ;;  %v4030_v45 = vpop.permute.xlu0 %1875  ;;  %v1658_v44 = vsel %vm575_vm2, %v3962_v31, %v1652_v56  ;;  %v1662_v47 = vsel %vm575_vm2, %v1652_v56, %v3962_v31  ;;  %v4695_v56 = vld [vmem:[#allocation9_spill] sm:$0xff] }
 0x24b   : > { %1556 = vmatpush.msra.mxu3 %v1492_v6  ;;  %v1667_v39 = vmul.f32 %v1662_v47, %v4693_v2 }
 0x24c   : > { %1528 = vmatpush.msra.mxu2 %v1489_v14 }
 0x24d   : > { %1557 = vmatpush.msra.mxu3 %v1490_v9  ;;  %2854 = vmatmul.msk.f32.vlgmr.msra.gmra.mxu2 %vm418_vm0, %v1497_v62 }
 0x24e   : > { %2858 = vmatmul.msk.f32.vlgmr.msra.gmra.mxu3 %vm418_vm0, %v1497_v62 }
 0x24f   : > { %2222 = vrot.lane.b32.xlu1 %v3870_v33, %s3023_s11  ;;  %2220 = vrot.lane.b32.xlu2 %v3858_v60, %s3023_s11  ;;  %v1499_v60 = vld [vmem:[%s4620_s3 + $0x10] sm:$0xff]  ;;  %v1669_v33 = vmul.f32 %v1663_v52, %v4693_v2 }
 0x250   : > { %2218 = vrot.lane.b32.xlu0 %v3840_v57, %s3023_s11 }
 0x251   : > { %v4049_v29 = vpop.permute.xlu1 %1883  ;;  %v1648_v46 = vpop.permute.xlu2 %1647 }
 0x252   : > { %v4051_v19 = vpop.permute.xlu0 %1760  ;;  %v1889_v1 = vsel %vm821_vm4, %v4030_v45, %v4049_v29  ;;  %v1893_v22 = vsel %vm821_vm4, %v4049_v29, %v4030_v45  ;;  %v4696_v45 = vld [vmem:[#allocation10_spill] sm:$0xff]  ;;  %v2873_v29 = vld [vmem:[%s4620_s3 + $0x38] sm:$0xff] }
 0x255   : > { %2855 = vmatmul.msk.f32.gmra.mxu2 %vm418_vm0, %v1498_v7 }
 0x256   : > { %2859 = vmatmul.msk.f32.gmra.mxu3 %vm418_vm0, %v1498_v7  ;;  %v4697_v7 = vld [vmem:[#allocation8_spill] sm:$0xff] }
 0x257   : > { %2226 = vrot.lane.b32.xlu1 %v3842_v23, %s3023_s11  ;;  %2339 = vrot.lane.b32.xlu2 %v3820_v51, %s3024_s16 }
 0x258   : > { %2224 = vrot.lane.b32.xlu0 %v3820_v51, %s3023_s11  ;;  %v1659_v51 = vsel %vm575_vm2, %v3975_v53, %v3954_v13  ;;  %v1668_v13 = vmul.f32 %v1658_v44, %v4694_v20  ;;  %v1666_v53 = vmul.f32 %v1657_v40, %v4694_v20 }
 0x259   : > { %v4064_v57 = vpop.permute.xlu1 %1873  ;;  %v4066_v34 = vpop.permute.xlu2 %1766  ;;  %v1670_v37 = vmul.f32 %v1659_v51, %v4694_v20  ;;  %v1900_v51 = vmul.f32 %v1889_v1, %v4696_v45 }
 0x25a   : > { %v1656_v24 = vpop.permute.xlu0 %1655  ;;  %v1892_v26 = vsel %vm821_vm4, %v3990_v27, %v4064_v57  ;;  %v1888_v52 = vsel %vm821_vm4, %v4064_v57, %v3990_v27 }
 0x25b   : > { %v1660_v16 = vsel %vm575_vm2, %v1648_v46, %v1656_v24  ;;  %v1664_v23 = vsel %vm575_vm2, %v1656_v24, %v1648_v46 }
 0x25c   : > { %v1671_v61 = vmul.f32 %v1664_v23, %v4693_v2  ;;  %v1672_v15 = vmul.f32 %v1660_v16, %v4694_v20  ;;  %v1899_v23 = vmul.f32 %v1893_v22, %v4695_v56  ;;  %v1897_v2 = vmul.f32 %v1892_v26, %v4695_v56  ;;  %v2896_v22 = vld [vmem:[%s4620_s3 + $0x70] sm:$0xff]  ;;  %v4700_v26 = vld [vmem:[#allocation14_spill] sm:$0xff] }
 0x25d   : > { %2856 = vmatmul.msk.f32.gmra.mxu2 %vm418_vm0, %v1499_v60 }
 0x25e   : > { %2860 = vmatmul.msk.f32.gmra.mxu3 %vm418_vm0, %v1499_v60  ;;  %1702 = vmatpush.msrb.mxu2 %v1671_v61  ;;  %v4698_v60 = vld [vmem:[#allocation7_spill] sm:$0xff] }
 0x25f   : > { %1731 = vmatpush.msrb.mxu3 %v1672_v15  ;;  %2452 = vperm.xlu1 %2980, %v2446_v21   ;;  %v1898_v15 = vmul.f32 %v1888_v52, %v4696_v45 }
 0x260   : > { %2230 = vrot.lane.b32.xlu2 %v3872_v50, %s3023_s11  ;;  %2462 = vperm.xlu0 %2982, %v2448_v3   ;;  %v1500_v50 = vld [vmem:[%s4620_s3 + $0x18] sm:$0xff] }
 0x261   : > { %1703 = vmatpush.msrb.mxu2 %v1669_v33  ;;  %1732 = vmatpush.msrb.mxu3 %v1670_v37  ;;  %v1769_v25 = vpop.permute.xlu1 %1768  ;;  %v4113_v4 = vpop.permute.xlu2 %2113 }
 0x262   : > { %v4115_v31 = vpop.permute.xlu0 %1879  ;;  %v1778_v48 = vsel %vm698_vm3, %v1769_v25, %v4051_v19  ;;  %v1774_v46 = vsel %vm698_vm3, %v4051_v19, %v1769_v25 }
 0x263   : > { %1704 = vmatpush.msrb.mxu2 %v1667_v39  ;;  %1733 = vmatpush.msrb.mxu3 %v1668_v13  ;;  %v1784_v61 = vmul.f32 %v1778_v48, %v4697_v7  ;;  %v1785_v20 = vmul.f32 %v1774_v46, %v4698_v60  ;;  %v1891_v27 = vsel %vm821_vm4, %v4115_v31, %v4027_v41  ;;  %v2882_v13 = vld [vmem:[%s4620_s3 + $0x40] sm:$0xff]  ;;  %v2885_v46 = vld [vmem:[%s4620_s3 + $0x58] sm:$0xff] }
 0x264   : > { %v1887_v21 = vsel %vm821_vm4, %v4027_v41, %v4115_v31  ;;  %v1895_v37 = vmul.f32 %v1891_v27, %v4695_v56  ;;  %v2894_v31 = vld [vmem:[%s4620_s3 + $0x60] sm:$0xff] }
 0x265   : > { %1705 = vmatpush.msrb.mxu2 %v1665_v17  ;;  %1734 = vmatpush.msrb.mxu3 %v1666_v53  ;;  %v1896_v12 = vmul.f32 %v1887_v21, %v4696_v45 }
 0x266   : > { %2857 = vmatmul.msk.f32.gmra.mxu2 %vm418_vm0, %v1500_v50  ;;  %2861 = vmatmul.msk.f32.gmra.mxu3 %vm418_vm0, %v1500_v50 }
 0x267   : > { %2467 = vperm.xlu1 %2980, %v2449_v54   ;;  %v2883_v54 = vld [vmem:[%s4620_s3 + $0x48] sm:$0xff] }
 0x268   : > { %2216 = vrot.lane.b32.xlu2 %v3818_v38, %s3023_s11 }
 0x269   : > { %v1759_v59 = vpop.permute.xlu1 %1758  ;;  %v4129_v35 = vpop.permute.xlu2 %2103 }
 0x26a   : > { %v1757_v18 = vpop.permute.xlu0 %1756  ;;  %v1773_v19 = vsel %vm698_vm3, %v1759_v59, %v4066_v34  ;;  %v1777_v57 = vsel %vm698_vm3, %v4066_v34, %v1759_v59  ;;  %v2895_v59 = vld [vmem:[%s4620_s3 + $0x68] sm:$0xff] }
 0x26b   : > { %v1783_v44 = vmul.f32 %v1773_v19, %v4698_v60  ;;  %v1782_v41 = vmul.f32 %v1777_v57, %v4697_v7 }
 0x26e   : > { %2874 = vmatmul.msk.f32.vlgmr.msrb.gmra.mxu2 %vm418_vm0, %v2870_v10  ;;  %2878 = vmatmul.msk.f32.vlgmr.msrb.gmra.mxu3 %vm418_vm0, %v2870_v10 }
 0x270   : > { %2457 = vperm.xlu2 %2981, %v2447_v11  }
 0x271   : > { %v1765_v63 = vpop.permute.xlu1 %1764  ;;  %v1886_v8 = vpop.permute.xlu2 %1885 }
 0x272   : > { %v4139_v38 = vpop.permute.xlu0 %2111  ;;  %v1772_v3 = vsel %vm698_vm3, %v1757_v18, %v1765_v63  ;;  %v1776_v47 = vsel %vm698_vm3, %v1765_v63, %v1757_v18 }
 0x273   : > { %v1781_v39 = vmul.f32 %v1772_v3, %v4698_v60  ;;  %v1780_v25 = vmul.f32 %v1776_v47, %v4697_v7 }
 0x276   : > { %2875 = vmatmul.msk.f32.gmra.mxu2 %vm418_vm0, %v2871_v42  ;;  %2879 = vmatmul.msk.f32.gmra.mxu3 %vm418_vm0, %v2871_v42 }
 0x279   : > { %v4146_v49 = vpop.permute.xlu1 %2105  ;;  %v1763_v43 = vpop.permute.xlu2 %1762 }
 0x27a   : > { %v4148_v0 = vpop.permute.xlu0 %2101  ;;  %v2119_v63 = vsel %vm1067_vm6, %v4146_v49, %v4113_v4 }
 0x27e   : > { %2876 = vmatmul.msk.f32.gmra.mxu2 %vm418_vm0, %v2872_v58  ;;  %2880 = vmatmul.msk.f32.gmra.mxu3 %vm418_vm0, %v2872_v58  ;;  %v4699_v58 = vld [vmem:[#allocation13_spill] sm:$0xff] }
 0x281   : > { %v1878_v32 = vpop.permute.xlu1 %1877  ;;  %v4163_v30 = vpop.permute.xlu2 %1998 }
 0x282   : > { %v1890_v5 = vsel %vm821_vm4, %v1878_v32, %v1886_v8  ;;  %v1894_v55 = vsel %vm821_vm4, %v1886_v8, %v1878_v32  ;;  %v1771_v6 = vpop.permute.xlu0 %1770  ;;  %v2118_v32 = vsel %vm1067_vm6, %v4129_v35, %v4139_v38 }
 0x283   : > { %v1901_v14 = vmul.f32 %v1894_v55, %v4695_v56  ;;  %v1902_v62 = vmul.f32 %v1890_v5, %v4696_v45  ;;  %v1775_v9 = vsel %vm698_vm3, %v1763_v43, %v1771_v6  ;;  %v1779_v28 = vsel %vm698_vm3, %v1771_v6, %v1763_v43  ;;  %v2884_v43 = vld [vmem:[%s4620_s3 + $0x50] sm:$0xff] }
 0x284   : > { %v1786_v24 = vmul.f32 %v1779_v28, %v4697_v7  ;;  %v1787_v16 = vmul.f32 %v1775_v9, %v4698_v60  ;;  %v2123_v5 = vsel %vm1067_vm6, %v4113_v4, %v4146_v49  ;;  %v2129_v55 = vmul.f32 %v2119_v63, %v4699_v58  ;;  %v4701_v7 = vld [vmem:[#allocation11_spill] sm:$0xff]  ;;  %v2908_v63 = vld [vmem:[%s4620_s3 + $0xb0] sm:$0xff] }
 0x285   : > { %1932 = vmatpush.msra.mxu2 %v1901_v14  ;;  %1961 = vmatpush.msra.mxu3 %v1902_v62  ;;  %v2122_v56 = vsel %vm1067_vm6, %v4139_v38, %v4129_v35  ;;  %v2127_v4 = vmul.f32 %v2118_v32, %v4699_v58  ;;  %v2130_v49 = vmul.f32 %v2123_v5, %v4700_v26 }
 0x286   : > { %2877 = vmatmul.msk.f32.gmra.mxu2 %vm418_vm0, %v2873_v29  ;;  %2881 = vmatmul.msk.f32.gmra.mxu3 %vm418_vm0, %v2873_v29  ;;  %v2128_v35 = vmul.f32 %v2122_v56, %v4700_v26 }
 0x287   : > { %1817 = vmatpush.msra.mxu0 %v1786_v24  ;;  %1846 = vmatpush.msra.mxu1 %v1787_v16  ;;  %v4702_v16 = vld [vmem:[#allocation12_spill] sm:$0xff] }
 0x288   : > { %1933 = vmatpush.msra.mxu2 %v1899_v23  ;;  %1962 = vmatpush.msra.mxu3 %v1900_v51  ;;  %v2897_v51 = vld [vmem:[%s4620_s3 + $0x78] sm:$0xff] }
 0x289   : > { %1818 = vmatpush.msra.mxu0 %v1784_v61  ;;  %1847 = vmatpush.msra.mxu1 %v1785_v20  ;;  %v4221_v34 = vpop.permute.xlu1 %1990  ;;  %v4223_v33 = vpop.permute.xlu2 %1988 }
 0x28a   : > { %1934 = vmatpush.msra.mxu2 %v1897_v2  ;;  %1963 = vmatpush.msra.mxu3 %v1898_v15  ;;  %v4227_v40 = vpop.permute.xlu0 %1996  ;;  %v2008_v52 = vsel %vm944_vm5, %v4163_v30, %v4221_v34 }
 0x28b   : > { %1848 = vmatpush.msra.mxu1 %v1783_v44  ;;  %1819 = vmatpush.msra.mxu0 %v1782_v41  ;;  %v2003_v2 = vsel %vm944_vm5, %v4223_v33, %v4227_v40  ;;  %v2007_v19 = vsel %vm944_vm5, %v4227_v40, %v4223_v33  ;;  %v2015_v20 = vmul.f32 %v2008_v52, %v4702_v16 }
 0x28c   : > { %1935 = vmatpush.msra.mxu2 %v1895_v37  ;;  %1964 = vmatpush.msra.mxu3 %v1896_v12  ;;  %v2012_v27 = vmul.f32 %v2003_v2, %v4701_v7  ;;  %v2013_v3 = vmul.f32 %v2007_v19, %v4702_v16  ;;  %v2918_v37 = vld [vmem:[%s4620_s3 + $0xc0] sm:$0xff]  ;;  %v2907_v12 = vld [vmem:[%s4620_s3 + $0xa8] sm:$0xff] }
 0x28d   : > { %1849 = vmatpush.msra.mxu1 %v1781_v39  ;;  %1820 = vmatpush.msra.mxu0 %v1780_v25  ;;  %v2919_v39 = vld [vmem:[%s4620_s3 + $0xc8] sm:$0xff] }
 0x28e   : > { %2890 = vmatmul.msk.f32.vlgmr.msra.gmra.mxu1 %vm418_vm0, %v2882_v13  ;;  %2886 = vmatmul.msk.f32.vlgmr.msra.gmra.mxu0 %vm418_vm0, %v2882_v13 }
 0x28f   : > { %2898 = vmatmul.msk.f32.vlgmr.msra.gmra.mxu2 %vm418_vm0, %v2894_v31  ;;  %2902 = vmatmul.msk.f32.vlgmr.msra.gmra.mxu3 %vm418_vm0, %v2894_v31 }
 0x291   : > { %v2110_v17 = vpop.permute.xlu1 %2109  ;;  %v2108_v53 = vpop.permute.xlu2 %2107 }
 0x292   : > { %v4242_v50 = vpop.permute.xlu0 %2343  ;;  %v2117_v6 = vsel %vm1067_vm6, %v4148_v0, %v2110_v17  ;;  %v2121_v45 = vsel %vm1067_vm6, %v2110_v17, %v4148_v0  ;;  %v2004_v0 = vsel %vm944_vm5, %v4221_v34, %v4163_v30  ;;  %v2906_v34 = vld [vmem:[%s4620_s3 + $0xa0] sm:$0xff] }
 0x293   : > { %v2125_v62 = vmul.f32 %v2117_v6, %v4699_v58  ;;  %v2126_v60 = vmul.f32 %v2121_v45, %v4700_v26  ;;  %v2014_v61 = vmul.f32 %v2004_v0, %v4701_v7 }
 0x296   : > { %2891 = vmatmul.msk.f32.gmra.mxu1 %vm418_vm0, %v2883_v54  ;;  %2887 = vmatmul.msk.f32.gmra.mxu0 %vm418_vm0, %v2883_v54 }
 0x297   : > { %2899 = vmatmul.msk.f32.gmra.mxu2 %vm418_vm0, %v2895_v59  ;;  %2903 = vmatmul.msk.f32.gmra.mxu3 %vm418_vm0, %v2895_v59  ;;  %v4703_v59 = vld [vmem:[#allocation17_spill] sm:$0xff] }
 0x299   : > { %v1987_v18 = vpop.permute.xlu1 %1986  ;;  %v1995_v10 = vpop.permute.xlu2 %1994 }
 0x29a   : > { %v2116_v11 = vpop.permute.xlu0 %2115  ;;  %v2002_v30 = vsel %vm944_vm5, %v1987_v18, %v1995_v10  ;;  %v2006_v15 = vsel %vm944_vm5, %v1995_v10, %v1987_v18  ;;  %v4704_v10 = vld [vmem:[#allocation18_spill] sm:$0xff] }
 0x29b   : > { %v2120_v8 = vsel %vm1067_vm6, %v2108_v53, %v2116_v11  ;;  %v2124_v42 = vsel %vm1067_vm6, %v2116_v11, %v2108_v53  ;;  %v2010_v44 = vmul.f32 %v2002_v30, %v4701_v7  ;;  %v2011_v33 = vmul.f32 %v2006_v15, %v4702_v16  ;;  %v2942_v15 = vld [vmem:[%s4620_s3 + $0x100] sm:$0xff] }
 0x29c   : > { %v2131_v1 = vmul.f32 %v2120_v8, %v4699_v58  ;;  %v2132_v48 = vmul.f32 %v2124_v42, %v4700_v26  ;;  %v2920_v42 = vld [vmem:[%s4620_s3 + $0xd0] sm:$0xff] }
 0x29e   : > { %2892 = vmatmul.msk.f32.gmra.mxu1 %vm418_vm0, %v2884_v43  ;;  %2162 = vmatpush.msrb.mxu2 %v2131_v1 }
 0x29f   : > { %2888 = vmatmul.msk.f32.gmra.mxu0 %vm418_vm0, %v2884_v43  ;;  %2900 = vmatmul.msk.f32.gmra.mxu2 %vm418_vm0, %v2896_v22 }
 0x2a0   : > { %2904 = vmatmul.msk.f32.gmra.mxu3 %vm418_vm0, %v2896_v22  ;;  %2163 = vmatpush.msrb.mxu2 %v2129_v55 }
 0x2a1   : > { %2191 = vmatpush.msrb.mxu3 %v2132_v48  ;;  %v2001_v14 = vpop.permute.xlu1 %2000  ;;  %v4296_v9 = vpop.permute.xlu2 %2335 }
 0x2a2   : > { %2164 = vmatpush.msrb.mxu2 %v2127_v4  ;;  %v1993_v28 = vpop.permute.xlu0 %1992  ;;  %v2349_v54 = vsel %vm1313_vm8, %v4296_v9, %v4242_v50  ;;  %v2353_v8 = vsel %vm1313_vm8, %v4242_v50, %v4296_v9 }
 0x2a3   : > { %2192 = vmatpush.msrb.mxu3 %v2130_v49  ;;  %v2005_v38 = vsel %vm944_vm5, %v1993_v28, %v2001_v14  ;;  %v2009_v29 = vsel %vm944_vm5, %v2001_v14, %v1993_v28  ;;  %v2359_v58 = vmul.f32 %v2349_v54, %v4703_v59  ;;  %v2360_v22 = vmul.f32 %v2353_v8, %v4704_v10  ;;  %v4705_v14 = vld [vmem:[#allocation15_spill] sm:$0xff] }
 0x2a4   : > { %v2016_v24 = vmul.f32 %v2005_v38, %v4701_v7  ;;  %2165 = vmatpush.msrb.mxu2 %v2125_v62  ;;  %v2017_v23 = vmul.f32 %v2009_v29, %v4702_v16  ;;  %v4706_v62 = vld [vmem:[#allocation16_spill] sm:$0xff]  ;;  %v2909_v38 = vld [vmem:[%s4620_s3 + $0xb8] sm:$0xff]  ;;  %v1629_v16 = vpop.f32.mrf.mxu1 }
 0x2a5   : > { %2193 = vmatpush.msrb.mxu3 %v2128_v35 }
 0x2a6   : > { %2893 = vmatmul.msk.f32.gmra.mxu1 %vm418_vm0, %v2885_v46  ;;  %2047 = vmatpush.msrb.mxu0 %v2016_v24  ;;  %v1600_v24 = vpop.f32.mrf.mxu0 }
 0x2a7   : > { %2194 = vmatpush.msrb.mxu3 %v2126_v60  ;;  %2889 = vmatmul.msk.f32.gmra.mxu0 %vm418_vm0, %v2885_v46  ;;  %v2921_v46 = vld [vmem:[%s4620_s3 + $0xd8] sm:$0xff] }
 0x2a8   : > { %2901 = vmatmul.msk.f32.gmra.mxu2 %vm418_vm0, %v2897_v51  ;;  %2905 = vmatmul.msk.f32.gmra.mxu3 %vm418_vm0, %v2897_v51 }
 0x2a9   : > { %2076 = vmatpush.msrb.mxu1 %v2017_v23  ;;  %2048 = vmatpush.msrb.mxu0 %v2014_v61  ;;  %v2342_v57 = vpop.permute.xlu1 %2341  ;;  %v2221_v47 = vpop.permute.xlu2 %2220 }
 0x2aa   : > { %v2334_v21 = vpop.permute.xlu0 %2333 }
 0x2ab   : > { %2077 = vmatpush.msrb.mxu1 %v2015_v20  ;;  %2049 = vmatpush.msrb.mxu0 %v2012_v27  ;;  %v2348_v43 = vsel %vm1313_vm8, %v2334_v21, %v2342_v57  ;;  %v2352_v1 = vsel %vm1313_vm8, %v2342_v57, %v2334_v21  ;;  %v2930_v21 = vld [vmem:[%s4620_s3 + $0xe0] sm:$0xff] }
 0x2ac   : > { %v2357_v26 = vmul.f32 %v2348_v43, %v4703_v59  ;;  %v2358_v55 = vmul.f32 %v2352_v1, %v4704_v10 }
 0x2ad   : > { %2078 = vmatpush.msrb.mxu1 %v2013_v3  ;;  %2050 = vmatpush.msrb.mxu0 %v2010_v44 }
 0x2af   : > { %2079 = vmatpush.msrb.mxu1 %v2011_v33  ;;  %2910 = vmatmul.msk.f32.vlgmr.msrb.gmra.mxu0 %vm418_vm0, %v2906_v34  ;;  %v1632_v33 = vpop.f32.mrf.mxu1 }
 0x2b0   : > { %2914 = vmatmul.msk.f32.vlgmr.msrb.gmra.mxu1 %vm418_vm0, %v2906_v34  ;;  %2922 = vmatmul.msk.f32.vlgmr.msrb.gmra.mxu2 %vm418_vm0, %v2918_v37  ;;  %v1603_v34 = vpop.f32.mrf.mxu0 }
 0x2b1   : > { %2926 = vmatmul.msk.f32.vlgmr.msrb.gmra.mxu3 %vm418_vm0, %v2918_v37  ;;  %v2332_v41 = vpop.permute.xlu1 %2331  ;;  %v2340_v13 = vpop.permute.xlu2 %2339  ;;  %v2943_v37 = vld [vmem:[%s4620_s3 + $0x108] sm:$0xff] }
 0x2b2   : > { %v2229_v40 = vpop.permute.xlu0 %2228  ;;  %v2347_v50 = vsel %vm1313_vm8, %v2332_v41, %v2340_v13  ;;  %v2351_v48 = vsel %vm1313_vm8, %v2340_v13, %v2332_v41  ;;  %v2931_v41 = vld [vmem:[%s4620_s3 + $0xe8] sm:$0xff] }
 0x2b3   : > { %v2355_v49 = vmul.f32 %v2347_v50, %v4703_v59  ;;  %v2356_v28 = vmul.f32 %v2351_v48, %v4704_v10  ;;  %v2234_v35 = vsel %vm1190_vm7, %v2221_v47, %v2229_v40  ;;  %v2238_v29 = vsel %vm1190_vm7, %v2229_v40, %v2221_v47 }
 0x2b4   : > { %v2244_v0 = vmul.f32 %v2234_v35, %v4705_v14  ;;  %v2245_v7 = vmul.f32 %v2238_v29, %v4706_v62 }
 0x2b7   : > { %2911 = vmatmul.msk.f32.gmra.mxu0 %vm418_vm0, %v2907_v12 }
 0x2b8   : > { %2915 = vmatmul.msk.f32.gmra.mxu1 %vm418_vm0, %v2907_v12  ;;  %2923 = vmatmul.msk.f32.gmra.mxu2 %vm418_vm0, %v2919_v39 }
 0x2b9   : > { %2927 = vmatmul.msk.f32.gmra.mxu3 %vm418_vm0, %v2919_v39  ;;  %v2346_v25 = vpop.permute.xlu1 %2345 }
 0x2ba   : > { %v2338_v31 = vpop.permute.xlu0 %2337  ;;  %v2231_v32 = vpop.permute.xlu2 %2230 }
 0x2bb   : > { %v2350_v17 = vsel %vm1313_vm8, %v2338_v31, %v2346_v25  ;;  %v2354_v53 = vsel %vm1313_vm8, %v2346_v25, %v2338_v31  ;;  %v2944_v25 = vld [vmem:[%s4620_s3 + $0x110] sm:$0xff] }
 0x2bc   : > { %v2361_v18 = vmul.f32 %v2350_v17, %v4703_v59  ;;  %v2362_v11 = vmul.f32 %v2354_v53, %v4704_v10  ;;  %v2932_v31 = vld [vmem:[%s4620_s3 + $0xf0] sm:$0xff]  ;;  %v1606_v17 = vpop.f32.mrf.mxu0  ;;  %v1635_v53 = vpop.f32.mrf.mxu1 }
 0x2be   : > { %2392 = vmatpush.msra.mxu2 %v2361_v18  ;;  %2421 = vmatpush.msra.mxu3 %v2362_v11  ;;  %v2945_v11 = vld [vmem:[%s4620_s3 + $0x118] sm:$0xff] }
 0x2bf   : > { %2912 = vmatmul.msk.f32.gmra.mxu0 %vm418_vm0, %v2908_v63 }
 0x2c0   : > { %2916 = vmatmul.msk.f32.gmra.mxu1 %vm418_vm0, %v2908_v63  ;;  %2924 = vmatmul.msk.f32.gmra.mxu2 %vm418_vm0, %v2920_v42  ;;  %v2933_v63 = vld [vmem:[%s4620_s3 + $0xf8] sm:$0xff] }
 0x2c1   : > { %2928 = vmatmul.msk.f32.gmra.mxu3 %vm418_vm0, %v2920_v42  ;;  %2393 = vmatpush.msra.mxu2 %v2359_v58  ;;  %v2223_v5 = vpop.permute.xlu1 %2222 }
 0x2c2   : > { %2422 = vmatpush.msra.mxu3 %v2360_v22  ;;  %v2235_v6 = vsel %vm1190_vm7, %v2223_v5, %v2231_v32  ;;  %v2239_v56 = vsel %vm1190_vm7, %v2231_v32, %v2223_v5  ;;  %v2219_v4 = vpop.permute.xlu0 %2218  ;;  %v2217_v23 = vpop.permute.xlu2 %2216 }
 0x2c3   : > { %v2246_v45 = vmul.f32 %v2235_v6, %v4705_v14  ;;  %v2247_v9 = vmul.f32 %v2239_v56, %v4706_v62  ;;  %2394 = vmatpush.msra.mxu2 %v2357_v26 }
 0x2c4   : > { %2423 = vmatpush.msra.mxu3 %v2358_v55  ;;  %v1609_v8 = vpop.f32.mrf.mxu0  ;;  %v1638_v42 = vpop.f32.mrf.mxu1 }
 0x2c5   : > { %2395 = vmatpush.msra.mxu2 %v2355_v49  ;;  %2277 = vmatpush.msra.mxu0 %v2246_v45 }
 0x2c6   : > { %2424 = vmatpush.msra.mxu3 %v2356_v28  ;;  %2306 = vmatpush.msra.mxu1 %v2247_v9 }
 0x2c7   : > { %2913 = vmatmul.msk.f32.gmra.mxu0 %vm418_vm0, %v2909_v38 }
 0x2c8   : > { %2917 = vmatmul.msk.f32.gmra.mxu1 %vm418_vm0, %v2909_v38  ;;  %2925 = vmatmul.msk.f32.gmra.mxu2 %vm418_vm0, %v2921_v46 }
 0x2c9   : > { %2929 = vmatmul.msk.f32.gmra.mxu3 %vm418_vm0, %v2921_v46  ;;  %2278 = vmatpush.msra.mxu0 %v2244_v0  ;;  %v2227_v60 = vpop.permute.xlu1 %2226 }
 0x2ca   : > { %2307 = vmatpush.msra.mxu1 %v2245_v7  ;;  %v2233_v51 = vsel %vm1190_vm7, %v2219_v4, %v2227_v60  ;;  %v2237_v52 = vsel %vm1190_vm7, %v2227_v60, %v2219_v4  ;;  %v2225_v2 = vpop.permute.xlu0 %2224 }
 0x2cb   : > { %v2242_v61 = vmul.f32 %v2233_v51, %v4705_v14  ;;  %v2243_v19 = vmul.f32 %v2237_v52, %v4706_v62  ;;  %v2232_v30 = vsel %vm1190_vm7, %v2217_v23, %v2225_v2  ;;  %v2236_v20 = vsel %vm1190_vm7, %v2225_v2, %v2217_v23 }
 0x2cc   : > { %v2240_v27 = vmul.f32 %v2232_v30, %v4705_v14  ;;  %v2241_v57 = vmul.f32 %v2236_v20, %v4706_v62 }
 0x2cd   : > { %2279 = vmatpush.msra.mxu0 %v2242_v61  ;;  %2308 = vmatpush.msra.mxu1 %v2243_v19 }
 0x2cf   : > { %2280 = vmatpush.msra.mxu0 %v2240_v27  ;;  %2309 = vmatpush.msra.mxu1 %v2241_v57 }
 0x2d0   : > { %2946 = vmatmul.msk.f32.vlgmr.msra.gmra.mxu2 %vm418_vm0, %v2942_v15  ;;  %v1530_v36 = vpop.f32.mrf.mxu2  ;;  %2934 = vmatmul.msk.f32.vlgmr.msra.gmra.mxu0 %vm418_vm0, %v2930_v21 }
 0x2d1   : > { %2950 = vmatmul.msk.f32.vlgmr.msra.gmra.mxu3 %vm418_vm0, %v2942_v15  ;;  %v1559_v3 = vpop.f32.mrf.mxu3  ;;  %2938 = vmatmul.msk.f32.vlgmr.msra.gmra.mxu1 %vm418_vm0, %v2930_v21  ;;  %v1601_v44 = vadd.f32 %v1600_v24, %v1530_v36 }
 0x2d2   : > { %v1630_v47 = vadd.f32 %v1629_v16, %v1559_v3 }
 0x2d8   : > { %2947 = vmatmul.msk.f32.gmra.mxu2 %vm418_vm0, %v2943_v37  ;;  %v1533_v40 = vpop.f32.mrf.mxu2  ;;  %2935 = vmatmul.msk.f32.gmra.mxu0 %vm418_vm0, %v2931_v41 }
 0x2d9   : > { %2951 = vmatmul.msk.f32.gmra.mxu3 %vm418_vm0, %v2943_v37  ;;  %v1562_v12 = vpop.f32.mrf.mxu3  ;;  %2939 = vmatmul.msk.f32.gmra.mxu1 %vm418_vm0, %v2931_v41  ;;  %v1604_v39 = vadd.f32 %v1603_v34, %v1533_v40 }
 0x2da   : > { %v1633_v13 = vadd.f32 %v1632_v33, %v1562_v12 }
 0x2e0   : > { %2948 = vmatmul.msk.f32.gmra.mxu2 %vm418_vm0, %v2944_v25  ;;  %v1536_v54 = vpop.f32.mrf.mxu2  ;;  %2936 = vmatmul.msk.f32.gmra.mxu0 %vm418_vm0, %v2932_v31 }
 0x2e1   : > { %2952 = vmatmul.msk.f32.gmra.mxu3 %vm418_vm0, %v2944_v25  ;;  %v1565_v59 = vpop.f32.mrf.mxu3  ;;  %2940 = vmatmul.msk.f32.gmra.mxu1 %vm418_vm0, %v2932_v31  ;;  %v1607_v18 = vadd.f32 %v1606_v17, %v1536_v54 }
 0x2e2   : > { %v1636_v10 = vadd.f32 %v1635_v53, %v1565_v59 }
 0x2e8   : > { %2949 = vmatmul.msk.f32.gmra.mxu2 %vm418_vm0, %v2945_v11  ;;  %2937 = vmatmul.msk.f32.gmra.mxu0 %vm418_vm0, %v2933_v63 }
 0x2e9   : > { %2953 = vmatmul.msk.f32.gmra.mxu3 %vm418_vm0, %v2945_v11  ;;  %v1539_v43 = vpop.f32.mrf.mxu2  ;;  %v1568_v58 = vpop.f32.mrf.mxu3  ;;  %2941 = vmatmul.msk.f32.gmra.mxu1 %vm418_vm0, %v2933_v63 }
 0x2ea   : > { %v1610_v1 = vadd.f32 %v1609_v8, %v1539_v43  ;;  %v1639_v22 = vadd.f32 %v1638_v42, %v1568_v58 }
 0x2f1   : > { %v1707_v50 = vpop.f32.mrf.mxu2  ;;  %v1736_v32 = vpop.f32.mrf.mxu3 }
 0x2f2   : > { %v1748_v26 = vadd.f32 %v1707_v50, %v1601_v44  ;;  %v1749_v48 = vadd.f32 %v1736_v32, %v1630_v47 }
 0x2f9   : > { %v1710_v5 = vpop.f32.mrf.mxu2  ;;  %v1739_v55 = vpop.f32.mrf.mxu3 }
 0x2fa   : > { %v1750_v6 = vadd.f32 %v1710_v5, %v1604_v39  ;;  %v1751_v56 = vadd.f32 %v1739_v55, %v1633_v13  ;;  %v2453_v5 = vpop.permute.xlu1 %2452 }
 0x301   : > { %v1713_v4 = vpop.f32.mrf.mxu2  ;;  %v1742_v49 = vpop.f32.mrf.mxu3 }
 0x302   : > { %v4474_v14 = vadd.f32 %v1713_v4, %v1607_v18  ;;  %v4476_v45 = vadd.f32 %v1742_v49, %v1636_v10 }
 0x309   : > { %v1716_v62 = vpop.f32.mrf.mxu2  ;;  %v1745_v9 = vpop.f32.mrf.mxu3 }
 0x30a   : > { %v4478_v28 = vadd.f32 %v1716_v62, %v1610_v1  ;;  %v4480_v35 = vadd.f32 %v1745_v9, %v1639_v22 }
 0x30b   : > { %v1851_v38 = vpop.f32.mrf.mxu1  ;;  %v1822_v29 = vpop.f32.mrf.mxu0 }
 0x30c   : > { %v1863_v39 = vadd.f32 %v1822_v29, %v1748_v26  ;;  %v1864_v13 = vadd.f32 %v1851_v38, %v1749_v48 }
 0x312   : > { %v1937_v46 = vpop.f32.mrf.mxu2  ;;  %v1966_v0 = vpop.f32.mrf.mxu3 }
 0x313   : > { %v1854_v7 = vpop.f32.mrf.mxu1  ;;  %v1825_v24 = vpop.f32.mrf.mxu0  ;;  %v1978_v25 = vadd.f32 %v1937_v46, %v1863_v39  ;;  %v1979_v31 = vadd.f32 %v1966_v0, %v1864_v13 }
 0x314   : > { %v1865_v8 = vadd.f32 %v1825_v24, %v1750_v6  ;;  %v1866_v43 = vadd.f32 %v1854_v7, %v1751_v56 }
 0x31a   : > { %v1940_v60 = vpop.f32.mrf.mxu2  ;;  %v1969_v16 = vpop.f32.mrf.mxu3 }
 0x31b   : > { %v1857_v23 = vpop.f32.mrf.mxu1  ;;  %v1980_v1 = vadd.f32 %v1940_v60, %v1865_v8  ;;  %v1981_v22 = vadd.f32 %v1969_v16, %v1866_v43 }
 0x31c   : > { %v1828_v51 = vpop.f32.mrf.mxu0  ;;  %v1868_v0 = vadd.f32 %v1857_v23, %v4476_v45 }
 0x31d   : > { %v1867_v6 = vadd.f32 %v1828_v51, %v4474_v14 }
 0x322   : > { %v1943_v52 = vpop.f32.mrf.mxu2 }
 0x323   : > { %v1972_v2 = vpop.f32.mrf.mxu3  ;;  %v4482_v61 = vpop.f32.mrf.mxu1  ;;  %v1982_v60 = vadd.f32 %v1943_v52, %v1867_v6 }
 0x324   : > { %v4484_v19 = vpop.f32.mrf.mxu0  ;;  %v1983_v16 = vadd.f32 %v1972_v2, %v1868_v0 }
 0x325   : > { %v1869_v52 = vadd.f32 %v4484_v19, %v4478_v28 }
 0x32b   : > { %v4486_v30 = vpop.f32.mrf.mxu2  ;;  %v4488_v20 = vpop.f32.mrf.mxu3 }
 0x32c   : > { %v2052_v27 = vpop.f32.mrf.mxu0 }
 0x32d   : > { %v2081_v57 = vpop.f32.mrf.mxu1  ;;  %v2093_v53 = vadd.f32 %v2052_v27, %v1978_v25  ;;  %v1984_v25 = vadd.f32 %v4486_v30, %v1869_v52 }
 0x32e   : > { %v2094_v59 = vadd.f32 %v2081_v57, %v1979_v31 }
 0x333   : > { %v2167_v15 = vpop.f32.mrf.mxu2 }
 0x334   : > { %v2196_v21 = vpop.f32.mrf.mxu3  ;;  %v2055_v36 = vpop.f32.mrf.mxu0  ;;  %v2208_v10 = vadd.f32 %v2167_v15, %v2093_v53 }
 0x335   : > { %v2084_v3 = vpop.f32.mrf.mxu1  ;;  %v2209_v63 = vadd.f32 %v2196_v21, %v2094_v59  ;;  %v2095_v32 = vadd.f32 %v2055_v36, %v1980_v1  ;;  %v2458_v36 = vpop.permute.xlu2 %2457 }
 0x336   : > { %v2096_v55 = vadd.f32 %v2084_v3, %v1981_v22 }
 0x33b   : > { %v2170_v44 = vpop.f32.mrf.mxu2 }
 0x33c   : > { %v2199_v47 = vpop.f32.mrf.mxu3  ;;  %v2058_v34 = vpop.f32.mrf.mxu0  ;;  %v2210_v62 = vadd.f32 %v2170_v44, %v2095_v32 }
 0x33d   : > { %v2087_v33 = vpop.f32.mrf.mxu1  ;;  %v2211_v29 = vadd.f32 %v2199_v47, %v2096_v55  ;;  %v2097_v57 = vadd.f32 %v2058_v34, %v1982_v60  ;;  %v1870_v34 = vadd.f32 %v4482_v61, %v4480_v35 }
 0x33e   : > { %v2098_v3 = vadd.f32 %v2087_v33, %v1983_v16 }
 0x343   : > { %v2173_v37 = vpop.f32.mrf.mxu2 }
 0x344   : > { %v2202_v41 = vpop.f32.mrf.mxu3  ;;  %v4490_v40 = vpop.f32.mrf.mxu0  ;;  %v2212_v39 = vadd.f32 %v2173_v37, %v2097_v57  ;;  %v1985_v37 = vadd.f32 %v4488_v20, %v1870_v34 }
 0x345   : > { %v4492_v12 = vpop.f32.mrf.mxu1  ;;  %v2213_v45 = vadd.f32 %v2202_v41, %v2098_v3  ;;  %v2099_v41 = vadd.f32 %v4490_v40, %v1984_v25 }
 0x346   : > { %v2100_v28 = vadd.f32 %v4492_v12, %v1985_v37  ;;  %v2482_v37 = vld [vmem:[%s4623_s6] sm:$0x1] }
 0x34b   : > { %v4494_v17 = vpop.f32.mrf.mxu2 }
 0x34c   : > { %v4496_v54 = vpop.f32.mrf.mxu3  ;;  %v2214_v35 = vadd.f32 %v4494_v17, %v2099_v41 }
 0x34d   : > { %v2282_v18 = vpop.f32.mrf.mxu0  ;;  %v2215_v30 = vadd.f32 %v4496_v54, %v2100_v28  ;;  %v2483_v28 = vld [vmem:[%s4624_s7] sm:$0xff] }
 0x34e   : > { %v2311_v11 = vpop.f32.mrf.mxu1  ;;  %v2323_v42 = vadd.f32 %v2282_v18, %v2208_v10  ;;  %v2463_v18 = vpop.permute.xlu0 %2462 }
 0x34f   : > { %v2324_v58 = vadd.f32 %v2311_v11, %v2209_v63 }
 0x353   : > { %v2397_v50 = vpop.f32.mrf.mxu2 }
 0x354   : > { %v2438_v26 = vadd.f32 %v2397_v50, %v2323_v42  ;;  %v2426_v48 = vpop.f32.mrf.mxu3  ;;  %v3026_v50 = vmov 256.0  }
 0x355   : > { %v2439_v4 = vadd.f32 %v2426_v48, %v2324_v58  ;;  %v2285_v49 = vpop.f32.mrf.mxu0  ;;  %v2468_v58 = vpop.permute.xlu1 %2467  ;;  %2983 = vrcp.f32 %v3026_v50 }
 0x356   : > { %v4498_v9 = vadd.f32 %v2453_v5, %v2438_v26  ;;  %v2314_v38 = vpop.f32.mrf.mxu1  ;;  %v2325_v56 = vadd.f32 %v2285_v49, %v2210_v62 }
 0x357   : > { %v4500_v46 = vadd.f32 %v2453_v5, %v2439_v4  ;;  %v2326_v7 = vadd.f32 %v2314_v38, %v2211_v29  ;;  %v2479_v29 = vld [vmem:[%s4622_s5 + $0x8] sm:$0xff] }
 0x359   : > { %v2491_v24 = vadd.f32 %v4500_v46, %v4498_v9 }
 0x35b   : > { %2492 = vadd.xlane.f32.xlu2 %v2491_v24  ;;  %v2400_v27 = vpop.f32.mrf.mxu2  ;;  %v2984_v32 = vpop.eup %2983  ;;  %v2480_v24 = vld [vmem:[%s4622_s5 + $0x10] sm:$0xff] }
 0x35c   : > { %v2440_v15 = vadd.f32 %v2400_v27, %v2325_v56  ;;  %v2429_v21 = vpop.f32.mrf.mxu3  ;;  %v2504_v26 = vmul.f32 256.0, %v2984_v32  ;;  %vm2508_vm9 = vweird.f32 %v2984_v32 }
 0x35d   : > { %v2441_v44 = vadd.f32 %v2429_v21, %v2326_v7  ;;  %v2288_v47 = vpop.f32.mrf.mxu0  ;;  %v2478_v7 = vld [vmem:[%s4622_s5] sm:$0xff] }
 0x35e   : > { %v4506_v14 = vadd.f32 %v2458_v36, %v2440_v15  ;;  %v2317_v51 = vpop.f32.mrf.mxu1  ;;  %v2327_v2 = vadd.f32 %v2288_v47, %v2212_v39  ;;  %v2505_v48 = vsub.f32 1.0, %v2504_v26  ;;  %v2481_v15 = vld [vmem:[%s4622_s5 + $0x18] sm:$0xff] }
 0x35f   : > { %v4508_v23 = vadd.f32 %v2458_v36, %v2441_v44  ;;  %v2328_v13 = vadd.f32 %v2317_v51, %v2213_v45 }
 0x360   : > { %v2506_v5 = vmul.f32 %v2984_v32, %v2505_v48 }
 0x361   : > { %v2494_v33 = vadd.f32 %v4508_v23, %v4506_v14 }
 0x362   : > { %v2507_v55 = vadd.f32 %v2984_v32, %v2506_v5 }
 0x363   : > { %2495 = vadd.xlane.f32.xlu0 %v2494_v33  ;;  %v2403_v31 = vpop.f32.mrf.mxu2 }
 0x364   : > { %v2442_v53 = vadd.f32 %v2403_v31, %v2327_v2  ;;  %v2432_v59 = vpop.f32.mrf.mxu3  ;;  %v2509_v49 = vsel %vm2508_vm9, %v2984_v32, %v2507_v55 }
 0x365   : > { %v2443_v19 = vadd.f32 %v2432_v59, %v2328_v13  ;;  %v2291_v10 = vpop.f32.mrf.mxu0  ;;  %v2485_v59 = vld [vmem:[%s4624_s7 + $0x10] sm:$0xff] }
 0x366   : > { %v4521_v61 = vadd.f32 %v2463_v18, %v2442_v53  ;;  %v2320_v11 = vpop.f32.mrf.mxu1  ;;  %v2329_v20 = vadd.f32 %v2291_v10, %v2214_v35 }
 0x367   : > { %v4524_v63 = vadd.f32 %v2463_v18, %v2443_v19  ;;  %v2330_v8 = vadd.f32 %v2320_v11, %v2215_v30  ;;  %v2484_v18 = vld [vmem:[%s4624_s7 + $0x8] sm:$0xff] }
 0x369   : > { %v2497_v40 = vadd.f32 %v4524_v63, %v4521_v61 }
 0x36b   : > { %2498 = vadd.xlane.f32.xlu1 %v2497_v40  ;;  %v2406_v42 = vpop.f32.mrf.mxu2  ;;  %v2486_v40 = vld [vmem:[%s4624_s7 + $0x18] sm:$0xff] }
 0x36c   : > { %v2444_v43 = vadd.f32 %v2406_v42, %v2329_v20  ;;  %v2435_v12 = vpop.f32.mrf.mxu3 }
 0x36d   : > { %v2445_v1 = vadd.f32 %v2435_v12, %v2330_v8  ;;  %v2489_v12 = vld [vmem:[%s4625_s8 + $0x10] sm:$0xff] }
 0x36e   : > { %v4528_v22 = vadd.f32 %v2468_v58, %v2444_v43 }
 0x36f   : > { %v4530_v17 = vadd.f32 %v2468_v58, %v2445_v1  ;;  %v2488_v58 = vld [vmem:[%s4625_s8 + $0x8] sm:$0xff]  ;;  %v2487_v1 = vld [vmem:[%s4625_s8] sm:$0xff] }
 0x371   : > { %v2500_v54 = vadd.f32 %v4530_v17, %v4528_v22 }
 0x373   : > { %2501 = vadd.xlane.f32.xlu2 %v2500_v54 }
 0x3ce   : > { %v2493_v62 = vpop.xlane.xlu2 %2492 }
 0x3cf   : > { %v2510_v56 = vmul.f32 %v2509_v49, %v2493_v62  ;;  %v2490_v62 = vld [vmem:[%s4625_s8 + $0x18] sm:$0xff] }
 0x3d1   : > { %v2514_v16 = vmul.f32 %v2510_v56, %v2478_v7 }
 0x3d3   : > { %v2519_v36 = vsel %vm2518_vm10, %v2514_v16, 0.0 }
 0x3d6   : > { %v2496_v4 = vpop.xlane.xlu0 %2495 }
 0x3d7   : > { %v2511_v38 = vmul.f32 %v2509_v49, %v2496_v4 }
 0x3d9   : > { %v2515_v60 = vmul.f32 %v2511_v38, %v2479_v29 }
 0x3db   : > { %v2520_v57 = vsel %vm2518_vm10, %v2515_v60, 0.0 }
 0x3dc   : > { %v2521_v47 = vadd.f32 %v2520_v57, %v2519_v36 }
 0x3de   : > { %v2499_v6 = vpop.xlane.xlu1 %2498 }
 0x3df   : > { %v2512_v0 = vmul.f32 %v2509_v49, %v2499_v6 }
 0x3e1   : > { %v2516_v27 = vmul.f32 %v2512_v0, %v2480_v24 }
 0x3e3   : > { %v2522_v3 = vsel %vm2518_vm10, %v2516_v27, 0.0 }
 0x3e4   : > { %v2523_v51 = vadd.f32 %v2522_v3, %v2521_v47 }
 0x3e6   : > { %v2502_v21 = vpop.xlane.xlu2 %2501 }
 0x3e7   : > { %v2513_v44 = vmul.f32 %v2509_v49, %v2502_v21 }
 0x3e9   : > { %v2517_v39 = vmul.f32 %v2513_v44, %v2481_v15 }
 0x3eb   : > { %v2524_v45 = vsel %vm2518_vm10, %v2517_v39, 0.0 }
 0x3ec   : > { %v2525_v52 = vadd.f32 %v2524_v45, %v2523_v51 }
 0x3ee   : > { %v2526_v2 = vrot.slane %v2525_v52, 4 }
 0x3f0   : > { %v2527_v34 = vadd.f32 %v2526_v2, %v2525_v52 }
 0x3f2   : > { %v2528_v13 = vrot.slane %v2527_v34, 2 }
 0x3f4   : > { %v2529_v33 = vadd.f32 %v2528_v13, %v2527_v34 }
 0x3f6   : > { %v2530_v25 = vrot.slane %v2529_v33, 1 }
 0x3f8   : > { %v2531_v31 = vadd.f32 %v2530_v25, %v2529_v33 }
 0x3fa   : > { %v2532_v41 = vadd.f32 %v2531_v31, %v2482_v37 }
 0x3fc   : > { %v2533_v53 = vmax.f32 %v2532_v41, 0.0 }
 0x3fe   : > { %v2534_v19 = vperm.slane %v2533_v53, 0 }
 0x400   : > { %v2537_v10 = vmul.f32 %v2534_v19, %v2485_v59  ;;  %v2536_v35 = vmul.f32 %v2534_v19, %v2484_v18  ;;  %v2535_v11 = vmul.f32 %v2534_v19, %v2483_v28  ;;  %v2538_v42 = vmul.f32 %v2534_v19, %v2486_v40 }
 0x402   : > { %v2545_v30 = vsel %vm2518_vm10, %v2537_v10, 0.0  ;;  %v2542_v20 = vsel %vm2518_vm10, %v2536_v35, 0.0  ;;  %v2539_v8 = vsel %vm2518_vm10, %v2535_v11, 0.0  ;;  %v2548_v43 = vsel %vm2518_vm10, %v2538_v42, 0.0 }
 0x403   : > { %2546 = vadd.xlane.f32.xlu1 %v2545_v30  ;;  %2543 = vadd.xlane.f32.xlu0 %v2542_v20 }
 0x404   : > { %2540 = vadd.xlane.f32.xlu2 %v2539_v8 }
 0x40c   : > { %2549 = vadd.xlane.f32.xlu2 %v2548_v43 }
 0x476   : > { %v2547_v54 = vpop.xlane.xlu1 %2546  ;;  %v2544_v50 = vpop.xlane.xlu0 %2543 }
 0x477   : > { %v2553_v32 = vadd.f32 %v2547_v54, %v2489_v12  ;;  %v2552_v26 = vadd.f32 %v2544_v50, %v2488_v58  ;;  %v2541_v48 = vpop.xlane.xlu2 %2540 }
 0x478   : > { %v2551_v5 = vadd.f32 %v2541_v48, %v2487_v1 }
 0x479   : > { %v2956_v55 = vmul.f32 -1.442695, %v2553_v32  ;;  %v2955_v4 = vmul.f32 -1.442695, %v2552_v26 }
 0x47a   : > { %v2954_v49 = vmul.f32 -1.442695, %v2551_v5 }
 0x47b   : > { %2985 = vpow2.f32 %v2956_v55 }
 0x47c   : > { %2987 = vpow2.f32 %v2955_v4 }
 0x47d   : > { %2989 = vpow2.f32 %v2954_v49  ;;  %v3001_v49 = vld [vmem:[%s3098_s18 + $0x20] sm:$0xff] }
 0x47f   : > { %v2550_v38 = vpop.xlane.xlu2 %2549 }
 0x480   : > { %v2554_v29 = vadd.f32 %v2550_v38, %v2490_v62  ;;  %v3002_v38 = vld [vmem:[%s3098_s18 + $0x28] sm:$0xff] }
 0x481   : > { %v2986_v6 = vpop.eup %2985 }
 0x482   : > { %v2988_v56 = vpop.eup %2987  ;;  %v2569_v0 = vadd.f32 1.0, %v2986_v6  ;;  %v2957_v60 = vmul.f32 -1.442695, %v2554_v29 }
 0x483   : > { %v2990_v7 = vpop.eup %2989  ;;  %v2568_v24 = vadd.f32 1.0, %v2988_v56 }
 0x484   : > { %2991 = vrcp.f32 %v2569_v0  ;;  %v2567_v16 = vadd.f32 1.0, %v2990_v7  ;;  %vm2606_vm11 = vweird.f32 %v2569_v0  ;;  %v2610_v47 = vand.u32 2147483647, %v2569_v0 }
 0x485   : > { %2993 = vrcp.f32 %v2568_v24  ;;  %v2595_v52 = vand.u32 2147483647, %v2568_v24  ;;  %v2612_v2 = vand.u32 2147483648, %v2569_v0  ;;  %v2597_v34 = vand.u32 2147483648, %v2568_v24 }
 0x486   : > { %2995 = vrcp.f32 %v2567_v16  ;;  %v2582_v37 = vand.u32 2147483648, %v2567_v16  ;;  %v2580_v53 = vand.u32 2147483647, %v2567_v16  ;;  %vm2591_vm15 = vweird.f32 %v2568_v24 }
 0x487   : > { %2997 = vpow2.f32 %v2957_v60  ;;  %vm2611_vm1 = vcmp.eq.f32.partialorder %v2610_v47, 8.507059e+37  ;;  %v2613_v18 = vor.u32 1.1754944e-38, %v2612_v2  ;;  %v2598_v28 = vor.u32 1.1754944e-38, %v2597_v34 }
 0x488   : > { %vm2576_vm3 = vweird.f32 %v2567_v16  ;;  %vm2596_vm4 = vcmp.eq.f32.partialorder %v2595_v52, 8.507059e+37  ;;  %v2583_v30 = vor.u32 1.1754944e-38, %v2582_v37  ;;  %vm2581_vm6 = vcmp.eq.f32.partialorder %v2580_v53, 8.507059e+37 }
 0x48a   : > { %v2992_v27 = vpop.eup %2991 }
 0x48b   : > { %v2994_v57 = vpop.eup %2993  ;;  %v2602_v15 = vmul.f32 %v2992_v27, %v2569_v0  ;;  %vm2607_vm12 = vweird.f32 %v2992_v27 }
 0x48c   : > { %v2996_v21 = vpop.eup %2995  ;;  %v2587_v36 = vmul.f32 %v2994_v57, %v2568_v24  ;;  %vm2592_vm13 = vweird.f32 %v2994_v57  ;;  %vm2608_vm0 = vmor %vm2606_vm11, %vm2607_vm12  ;;  %v3003_v24 = vld [vmem:[%s3098_s18 + $0x10] sm:$0xff] }
 0x48d   : > { %v2998_v3 = vpop.eup %2997  ;;  %v2603_v44 = vsub.f32 1.0, %v2602_v15  ;;  %v2572_v39 = vmul.f32 %v2996_v21, %v2567_v16  ;;  %vm2577_vm14 = vweird.f32 %v2996_v21  ;;  %vm2593_vm2 = vmor %vm2591_vm15, %vm2592_vm13  ;;  %v3004_v16 = vld [vmem:[%s3098_s18 + $0x18] sm:$0xff] }
 0x48e   : > { %v2570_v51 = vadd.f32 1.0, %v2998_v3  ;;  %v2588_v45 = vsub.f32 1.0, %v2587_v36  ;;  %vm2578_vm5 = vmor %vm2576_vm3, %vm2577_vm14  ;;  %v3007_v36 = vld [vmem:[%s3098_s18 + $0x30] sm:$0xff] }
 0x48f   : > { %v2604_v13 = vmul.f32 %v2992_v27, %v2603_v44  ;;  %v2573_v33 = vsub.f32 1.0, %v2572_v39  ;;  %v3008_v44 = vld [vmem:[%s3098_s18 + $0x38] sm:$0xff] }
 0x490   : > { %2999 = vrcp.f32 %v2570_v51  ;;  %v2589_v25 = vmul.f32 %v2994_v57, %v2588_v45  ;;  %v2627_v58 = vand.u32 2147483648, %v2570_v51  ;;  %v2625_v54 = vand.u32 2147483647, %v2570_v51 }
 0x491   : > { %v2605_v31 = vadd.f32 %v2992_v27, %v2604_v13  ;;  %v2574_v41 = vmul.f32 %v2996_v21, %v2573_v33  ;;  %vm2621_vm8 = vweird.f32 %v2570_v51 }
 0x492   : > { %v2590_v59 = vadd.f32 %v2994_v57, %v2589_v25  ;;  %v2628_v32 = vor.u32 1.1754944e-38, %v2627_v58  ;;  %vm2626_vm10 = vcmp.eq.f32.partialorder %v2625_v54, 8.507059e+37 }
 0x493   : > { %v2609_v19 = vsel %vm2608_vm0, %v2992_v27, %v2605_v31  ;;  %v2575_v10 = vadd.f32 %v2996_v21, %v2574_v41 }
 0x494   : > { %v2594_v35 = vsel %vm2593_vm2, %v2994_v57, %v2590_v59  ;;  %v2614_v11 = vsel %vm2611_vm1, %v2613_v18, %v2609_v19  ;;  %v3005_v57 = vld [vmem:[%s3098_s18] sm:$0xff] }
 0x495   : > { %v2599_v20 = vsel %vm2596_vm4, %v2598_v28, %v2594_v35  ;;  %2643 = vperm.xlu2 %2981, %v2614_v11   ;;  %v2579_v8 = vsel %vm2578_vm5, %v2996_v21, %v2575_v10  ;;  %v3006_v21 = vld [vmem:[%s3098_s18 + $0x8] sm:$0xff] }
 0x496   : > { %v3000_v40 = vpop.eup %2999  ;;  %2638 = vperm.xlu1 %2980, %v2599_v20   ;;  %v2584_v42 = vsel %vm2581_vm6, %v2583_v30, %v2579_v8 }
 0x497   : > { %2633 = vperm.xlu0 %2982, %v2584_v42   ;;  %v2617_v43 = vmul.f32 %v3000_v40, %v2570_v51  ;;  %vm2622_vm7 = vweird.f32 %v3000_v40 }
 0x498   : > { %vm2623_vm9 = vmor %vm2621_vm8, %vm2622_vm7 }
 0x499   : > { %v2618_v12 = vsub.f32 1.0, %v2617_v43 }
 0x49b   : > { %v2619_v1 = vmul.f32 %v3000_v40, %v2618_v12 }
 0x49d   : > { %v2620_v50 = vadd.f32 %v3000_v40, %v2619_v1 }
 0x49f   : > { %v2624_v26 = vsel %vm2623_vm9, %v3000_v40, %v2620_v50 }
 0x4a0   : > { %v2629_v48 = vsel %vm2626_vm10, %v2628_v32, %v2624_v26 }
 0x4a1   : > { %2648 = vperm.xlu0 %2982, %v2629_v48  }
 0x4ef   : > { %v2644_v5 = vpop.permute.xlu2 %2643 }
 0x4f0   : > { %v2655_v55 = vmul.f32 %v2644_v5, %v4521_v61  ;;  %v2656_v4 = vmul.f32 %v2644_v5, %v4524_v63 }
 0x4f2   : > { %v2663_v62 = vadd.f32 %v3001_v49, %v2655_v55  ;;  %v2664_v29 = vadd.f32 %v3002_v38, %v2656_v4 }
 0x4f4   : > { %2671 = vst [vmem:[%s4590_s30 + $0x20] sm:$0xff] %v2663_v62 }
 0x4f5   : > { %2672 = vst [vmem:[%s4590_s30 + $0x28] sm:$0xff] %v2664_v29 }
 0x508   : > { %v2639_v61 = vpop.permute.xlu1 %2638 }
 0x509   : > { %v2653_v63 = vmul.f32 %v2639_v61, %v4506_v14  ;;  %v2654_v6 = vmul.f32 %v2639_v61, %v4508_v23  ;;  %v2634_v56 = vpop.permute.xlu0 %2633 }
 0x50a   : > { %v2651_v0 = vmul.f32 %v2634_v56, %v4498_v9  ;;  %v2652_v7 = vmul.f32 %v2634_v56, %v4500_v46 }
 0x50b   : > { %v2661_v60 = vadd.f32 %v3003_v24, %v2653_v63  ;;  %v2662_v27 = vadd.f32 %v3004_v16, %v2654_v6 }
 0x50c   : > { %v2659_v15 = vadd.f32 %v3005_v57, %v2651_v0  ;;  %v2660_v14 = vadd.f32 %v3006_v21, %v2652_v7 }
 0x50d   : > { %2669 = vst [vmem:[%s4590_s30 + $0x10] sm:$0xff] %v2661_v60 }
 0x50e   : > { %2670 = vst [vmem:[%s4590_s30 + $0x18] sm:$0xff] %v2662_v27 }
 0x50f   : > { %2667 = vst [vmem:[%s4590_s30] sm:$0xff] %v2659_v15 }
 0x510   : > { %2668 = vst [vmem:[%s4590_s30 + $0x8] sm:$0xff] %v2660_v14 }
 0x513   : > { %v2649_v23 = vpop.permute.xlu0 %2648 }
 0x514   : > { %v2657_v9 = vmul.f32 %v2649_v23, %v4528_v22  ;;  %v2658_v46 = vmul.f32 %v2649_v23, %v4530_v17 }
 0x516   : > { %v2665_v3 = vadd.f32 %v3007_v36, %v2657_v9  ;;  %v2666_v47 = vadd.f32 %v3008_v44, %v2658_v46 }
 0x518   : > { %2673 = vst [vmem:[%s4590_s30 + $0x30] sm:$0xff] %v2665_v3 }
 0x519   : > { %2674 = vst [vmem:[%s4590_s30 + $0x38] sm:$0xff] %v2666_v47 }
 0x51a PF: > { %s20_s13 = sadd.s32 1, %s3015_s13  }
 0x51b   : > { %p17_p4 = scmp.ge.s32.totalorder %s20_s13, 4  }
 0x51d   :  { %19 = sbr.rel (!%p17_p4) target bundleno = 1 (0x1), region = 113 }

</bundles_post_ra>
